<compile_context>
chip_gen: v5e
topology: v5e:2x2
jax: 0.10.0
libtpu: 0.0.40
codegen_flags: <defaults>
</compile_context>

<pallas_src>
import functools

import jax
import jax.numpy as jnp
from jax.experimental import pallas as pl
from jax.experimental.pallas import tpu as pltpu


# dtype for the serial-path MXU operands (weights + h). f32 accumulation always.
_MM_DTYPE = jnp.bfloat16


# ---------------------------------------------------------------------------
# Single fused kernel. PyTorch gate order: i, f, g, o (column blocks of H).
# Weights/biases arrive with i/f/o columns pre-halved (see _prepare_params) so
# a single full-vreg tanh + affine recovers sigmoid(i,f,o) and tanh(g).
# ---------------------------------------------------------------------------
def _rnn_fused_kernel(*refs, T, H, num_layers):
    """refs layout:
         [0:4]                         x_ref (T,Din), w_ih0 (Din,4H), w_hh0 (H,4H), b0 (1,4H)
         [4 + 2i : 6 + 2i], i<L-1      w_fused_l (2H,4H), b_l (1,4H)      (layers 1..L-1)
         [base : base+4]               w1_t (H,26), b1 (1,26), w2_t (26,2), b2 (1,2)
         [base+4]                      out_ref (T, 2)
         [base+5]                      hseq scratch (T, H) VMEM  (final layer only)
    """
    x_ref, w_ih0_ref, w_hh0_ref, b0_ref = refs[0:4]
    upper = [(refs[4 + 2 * i], refs[5 + 2 * i]) for i in range(num_layers - 1)]
    base = 4 + 2 * (num_layers - 1)
    w1_ref, b1_ref, w2_ref, b2_ref = refs[base:base + 4]
    out_ref = refs[base + 4]
    hseq_scr = refs[base + 5]

    H4 = 4 * H
    mm_dtype = w_hh0_ref.dtype

    # Hoisted constants: re-affine vectors for the sigmoid->tanh folding.
    # Lane layout of the gate vector is [i | f | g | o], H lanes each.
    lane = jax.lax.broadcasted_iota(jnp.int32, (1, H4), 1)
    is_g = (lane >= 2 * H) & (lane < 3 * H)
    gate_scale = jnp.where(is_g, 1.0, 0.5).astype(jnp.float32)
    gate_offset = jnp.where(is_g, 0.0, 0.5).astype(jnp.float32)

    # Hoisted layer-0 input projection over all T steps (bias b_ih+b_hh folded in).
    gx0 = jnp.dot(x_ref[...].astype(jnp.float32), w_ih0_ref[...].astype(jnp.float32),
                  preferred_element_type=jnp.float32) + b0_ref[...]           # (T, 4H)

    def gate_update(pre, c_prev):
        # pre already carries i/f/o columns pre-scaled by 0.5, so one full-vreg tanh
        # gives [tanh(gi/2), tanh(gf/2), tanh(gg), tanh(go/2)]; the affine below maps
        # the i/f/o blocks to sigmoid and leaves g as tanh.
        th = jnp.tanh(pre)                       # one full-(1,4H)-vreg EUP push
        act = th * gate_scale + gate_offset
        i_g = act[:, 0 * H:1 * H]
        f_g = act[:, 1 * H:2 * H]
        g_g = act[:, 2 * H:3 * H]
        o_g = act[:, 3 * H:4 * H]
        c_new = f_g * c_prev + i_g * g_g
        h_new = o_g * jnp.tanh(c_new)
        return h_new, c_new

    h = [jnp.zeros((1, H), jnp.float32) for _ in range(num_layers)]
    c = [jnp.zeros((1, H), jnp.float32) for _ in range(num_layers)]

    # Layer wavefront: step s computes (layer0, t=s), (layer1, t=s-1), ... using only
    # states produced at wavefront step s-1, so per-step layer work is independent.
    for s in range(T + num_layers - 1):
        prev_h = list(h)                          # snapshot: inputs for this wavefront step
        for l in range(num_layers):
            t = s - l
            if t < 0 or t >= T:
                continue
            if l == 0:
                pre = gx0[t:t + 1, :] + jnp.dot(
                    prev_h[0].astype(mm_dtype), w_hh0_ref[...],
                    preferred_element_type=jnp.float32)
            else:
                w_f_ref, b_ref = upper[l - 1]
                hin = jnp.concatenate([prev_h[l - 1], prev_h[l]], axis=1)     # (1, 2H)
                pre = jnp.dot(hin.astype(mm_dtype), w_f_ref[...],
                              preferred_element_type=jnp.float32) + b_ref[...]
            h[l], c[l] = gate_update(pre, c[l])
            if l == num_layers - 1:               # only the last layer's sequence is needed
                hseq_scr[pl.ds(t, 1), :] = h[l]

    # Head: tanh(lin1) -> lin2 -> softmax(dim=1). Runs once; exact division.
    cur = hseq_scr[...]                                                        # (T, H)
    y1 = jnp.tanh(jnp.dot(cur, w1_ref[...],
                          preferred_element_type=jnp.float32) + b1_ref[...])   # (T, 26)
    y2 = jnp.dot(y1, w2_ref[...],
                 preferred_element_type=jnp.float32) + b2_ref[...]             # (T, 2)
    m = jnp.max(y2, axis=1, keepdims=True)
    e = jnp.exp(y2 - m)
    out_ref[...] = e / jnp.sum(e, axis=1, keepdims=True)


# ---------------------------------------------------------------------------
# Param prep: fold sigmoid into tanh (halve i/f/o columns), fuse [W_ih;W_hh] for
# upper layers, and cast serial-path matmul operands to the MXU dtype.
# ---------------------------------------------------------------------------
def _prepare_params(params, hidden_size, mm_dtype=_MM_DTYPE):
    H = hidden_size
    col_scale = jnp.full((1, 4 * H), 0.5, jnp.float32).at[:, 2 * H:3 * H].set(1.0)

    lstm = params["lstm"]
    kp = {}
    l0 = lstm[0]
    kp["w_ih0"] = l0["w_ih_t"] * col_scale                       # f32 (hoisted projection)
    kp["w_hh0"] = (l0["w_hh_t"] * col_scale).astype(mm_dtype)    # serial-path matmul
    kp["b0"] = l0["b"] * col_scale
    kp["fused"] = []
    for lp in lstm[1:]:
        w_f = jnp.concatenate([lp["w_ih_t"], lp["w_hh_t"]], axis=0) * col_scale   # (2H, 4H)
        kp["fused"].append((w_f.astype(mm_dtype), lp["b"] * col_scale))
    kp["w1_t"], kp["b1"] = params["w1_t"], params["b1"]
    kp["w2_t"], kp["b2"] = params["w2_t"], params["b2"]
    return kp


def rnn_forward(params, x, hidden_size):
    """x: (T, B=1, input_size) -> (T, 2) softmax probabilities."""
    T, B, D_in = x.shape
    assert B == 1, "module design (x.view(T, -1) into Linear(hidden, 26)) assumes B == 1"
    # TODO(synk): if batching of independent sequences is allowed, stack them along the
    # matmul M dimension (h -> (B,H)) and add a parallel grid axis for the v7x 2nd core.
    H = hidden_size
    num_layers = len(params["lstm"])
    kp = _prepare_params(params, H)
    x2d = x.reshape(T, D_in)

    inputs = [x2d, kp["w_ih0"], kp["w_hh0"], kp["b0"]]
    in_specs = [
        pl.BlockSpec((T, D_in), lambda: (0, 0)),
        pl.BlockSpec((D_in, 4 * H), lambda: (0, 0)),
        pl.BlockSpec((H, 4 * H), lambda: (0, 0)),
        pl.BlockSpec((1, 4 * H), lambda: (0, 0)),
    ]
    for w_f, b in kp["fused"]:
        inputs += [w_f, b]
        in_specs += [pl.BlockSpec((2 * H, 4 * H), lambda: (0, 0)),
                     pl.BlockSpec((1, 4 * H), lambda: (0, 0))]
    inputs += [kp["w1_t"], kp["b1"], kp["w2_t"], kp["b2"]]
    in_specs += [
        pl.BlockSpec((H, 26), lambda: (0, 0)),
        pl.BlockSpec((1, 26), lambda: (0, 0)),
        pl.BlockSpec((26, 2), lambda: (0, 0)),
        pl.BlockSpec((1, 2), lambda: (0, 0)),
    ]

    kernel = functools.partial(_rnn_fused_kernel, T=T, H=H, num_layers=num_layers)
    return pl.pallas_call(
        kernel,
        out_shape=jax.ShapeDtypeStruct((T, 2), jnp.float32),
        in_specs=in_specs,
        out_specs=pl.BlockSpec((T, 2), lambda: (0, 0)),
        scratch_shapes=[pltpu.VMEM((T, H), jnp.float32)],   # final-layer hidden sequence
    )(*inputs)


# ---------------------------------------------------------------------------
# Parameter init (deterministic, PyTorch-style uniform ranges, "natural" layout:
# transposed weights, pre-added biases b = b_ih + b_hh).
# ---------------------------------------------------------------------------
def init_params(key, input_size, hidden_size, num_layers):
    params = {"lstm": []}
    std = 1.0 / jnp.sqrt(hidden_size)
    for layer in range(num_layers):
        d_in = input_size if layer == 0 else hidden_size
        key, k1, k2, k3, k4 = jax.random.split(key, 5)
        w_ih = jax.random.uniform(k1, (4 * hidden_size, d_in), jnp.float32, -std, std)
        w_hh = jax.random.uniform(k2, (4 * hidden_size, hidden_size), jnp.float32, -std, std)
        b_ih = jax.random.uniform(k3, (4 * hidden_size,), jnp.float32, -std, std)
        b_hh = jax.random.uniform(k4, (4 * hidden_size,), jnp.float32, -std, std)
        params["lstm"].append(
            dict(w_ih_t=w_ih.T, w_hh_t=w_hh.T, b=(b_ih + b_hh).reshape(1, -1)))
    key, k1, k2, k3, k4 = jax.random.split(key, 5)
    s1 = 1.0 / jnp.sqrt(hidden_size)
    w1 = jax.random.uniform(k1, (26, hidden_size), jnp.float32, -s1, s1)
    b1 = jax.random.uniform(k2, (26,), jnp.float32, -s1, s1)
    s2 = 1.0 / jnp.sqrt(26.0)
    w2 = jax.random.uniform(k3, (2, 26), jnp.float32, -s2, s2)
    b2 = jax.random.uniform(k4, (2,), jnp.float32, -s2, s2)
    params["w1_t"] = w1.T
    params["b1"] = b1.reshape(1, -1)
    params["w2_t"] = w2.T
    params["b2"] = b2.reshape(1, -1)
    return params


# Pure-JAX reference (f32), mirrors torch: stacked LSTM -> tanh(lin1) -> lin2 -> softmax.
def _reference_forward(params, x, hidden_size):
    T, B, D = x.shape
    H = hidden_size
    cur = x.reshape(T, D)
    for lp in params["lstm"]:
        w_ih_t, w_hh_t, b = lp["w_ih_t"], lp["w_hh_t"], lp["b"]
        h = jnp.zeros((1, H), jnp.float32)
        c = jnp.zeros((1, H), jnp.float32)
        outs = []
        for t in range(T):
            g = cur[t:t + 1] @ w_ih_t + h @ w_hh_t + b
            i_g = jax.nn.sigmoid(g[:, 0 * H:1 * H])
            f_g = jax.nn.sigmoid(g[:, 1 * H:2 * H])
            g_g = jnp.tanh(g[:, 2 * H:3 * H])
            o_g = jax.nn.sigmoid(g[:, 3 * H:4 * H])
            c = f_g * c + i_g * g_g
            h = o_g * jnp.tanh(c)
            outs.append(h)
        cur = jnp.concatenate(outs, axis=0)
    y1 = jnp.tanh(cur @ params["w1_t"] + params["b1"])
    y2 = y1 @ params["w2_t"] + params["b2"]
    return jax.nn.softmax(y2, axis=1)


if __name__ == "__main__":
    INPUT_SIZE = 16     # frame size
    HIDDEN_SIZE = 32
    NUM_LAYERS = 2
    T = 8               # number of frames
    B = 1               # module design assumes batch_size == 1

    key = jax.random.PRNGKey(0)
    pkey, xkey = jax.random.split(key)
    params = init_params(pkey, INPUT_SIZE, HIDDEN_SIZE, NUM_LAYERS)
    x = jax.random.normal(xkey, (T, B, INPUT_SIZE), jnp.float32)

    out = rnn_forward(params, x, HIDDEN_SIZE)
    jax.block_until_ready(out)

    assert out.shape == (T, 2)
    assert bool(jnp.all(jnp.isfinite(out)))
    assert bool(jnp.allclose(jnp.sum(out, axis=1), 1.0, atol=1e-3))
    ref = _reference_forward(params, x, HIDDEN_SIZE)
    max_err = float(jnp.max(jnp.abs(out - ref)))
    assert max_err < 2e-2, f"kernel/reference mismatch: max abs err {max_err}"
    print("KERNEL_OK")
</pallas_src>

<mosaic_0001>
module attributes {stable_mosaic.version = 11 : i64} {
  func.func @_rnn_fused_kernel(%arg0: memref<8x16xf32, #tpu.memory_space<vmem>>, %arg1: memref<16x128xf32, #tpu.memory_space<vmem>>, %arg2: memref<32x128xbf16, #tpu.memory_space<vmem>>, %arg3: memref<1x128xf32, #tpu.memory_space<vmem>>, %arg4: memref<64x128xbf16, #tpu.memory_space<vmem>>, %arg5: memref<1x128xf32, #tpu.memory_space<vmem>>, %arg6: memref<32x26xf32, #tpu.memory_space<vmem>>, %arg7: memref<1x26xf32, #tpu.memory_space<vmem>>, %arg8: memref<26x2xf32, #tpu.memory_space<vmem>>, %arg9: memref<1x2xf32, #tpu.memory_space<vmem>>, %arg10: memref<8x2xf32, #tpu.memory_space<vmem>>, %arg11: memref<8x32xf32, #tpu.memory_space<vmem>>) attributes {dimension_semantics = [], scalar_prefetch = 0 : i64, scratch_operands = 1 : i64, tpu.core_type = #tpu.core_type<tc>} {
    %0 = tpu.iota {dimensions = array<i32: 1>} : vector<1x128xi32>
    %c64_i32 = arith.constant 64 : i32
    %1 = vector.broadcast %c64_i32 : i32 to vector<1x128xi32>
    %2 = arith.cmpi sge, %0, %1 : vector<1x128xi32>
    %c96_i32 = arith.constant 96 : i32
    %3 = vector.broadcast %c96_i32 : i32 to vector<1x128xi32>
    %4 = arith.cmpi slt, %0, %3 : vector<1x128xi32>
    %5 = arith.andi %2, %4 : vector<1x128xi1>
    %cst = arith.constant 1.000000e+00 : f32
    %cst_0 = arith.constant 5.000000e-01 : f32
    %6 = vector.broadcast %cst : f32 to vector<1x128xf32>
    %7 = vector.broadcast %cst_0 : f32 to vector<1x128xf32>
    %8 = arith.select %5, %6, %7 : vector<1x128xi1>, vector<1x128xf32>
    %cst_1 = arith.constant 0.000000e+00 : f32
    %cst_2 = arith.constant 5.000000e-01 : f32
    %9 = vector.broadcast %cst_1 : f32 to vector<1x128xf32>
    %10 = vector.broadcast %cst_2 : f32 to vector<1x128xf32>
    %11 = arith.select %5, %9, %10 : vector<1x128xi1>, vector<1x128xf32>
    %c0 = arith.constant 0 : index
    %c0_3 = arith.constant 0 : index
    %12 = vector.load %arg0[%c0, %c0_3] : memref<8x16xf32, #tpu.memory_space<vmem>>, vector<8x16xf32>
    %c0_4 = arith.constant 0 : index
    %c0_5 = arith.constant 0 : index
    %13 = vector.load %arg1[%c0_4, %c0_5] : memref<16x128xf32, #tpu.memory_space<vmem>>, vector<16x128xf32>
    %cst_6 = arith.constant dense<0.000000e+00> : vector<8x128xf32>
    %14 = tpu.matmul %12, %13, %cst_6 {dimension_numbers = #tpu.dot_dimension_numbers<[1], [0], [0], [1], [0, 0, 1, 1], [], []>} : vector<8x16xf32>, vector<16x128xf32>, vector<8x128xf32> -> vector<8x128xf32>
    %c0_7 = arith.constant 0 : index
    %c0_8 = arith.constant 0 : index
    %15 = vector.load %arg3[%c0_7, %c0_8] : memref<1x128xf32, #tpu.memory_space<vmem>>, vector<1x128xf32>
    %16 = vector.broadcast %15 : vector<1x128xf32> to vector<8x128xf32>
    %17 = arith.addf %14, %16 : vector<8x128xf32>
    %cst_9 = arith.constant 0.000000e+00 : f32
    %18 = vector.broadcast %cst_9 : f32 to vector<1x32xf32>
    %cst_10 = arith.constant 0.000000e+00 : f32
    %19 = vector.broadcast %cst_10 : f32 to vector<1x32xf32>
    %cst_11 = arith.constant 0.000000e+00 : f32
    %20 = vector.broadcast %cst_11 : f32 to vector<1x32xf32>
    %cst_12 = arith.constant 0.000000e+00 : f32
    %21 = vector.broadcast %cst_12 : f32 to vector<1x32xf32>
    %22 = vector.extract_strided_slice %17 {offsets = [0, 0], sizes = [1, 128], strides = [1, 1]} : vector<8x128xf32> to vector<1x128xf32>
    %23 = arith.truncf %18 : vector<1x32xf32> to vector<1x32xbf16>
    %c0_13 = arith.constant 0 : index
    %c0_14 = arith.constant 0 : index
    %24 = vector.load %arg2[%c0_13, %c0_14] : memref<32x128xbf16, #tpu.memory_space<vmem>>, vector<32x128xbf16>
    %cst_15 = arith.constant dense<0.000000e+00> : vector<1x128xf32>
    %25 = tpu.matmul %23, %24, %cst_15 {dimension_numbers = #tpu.dot_dimension_numbers<[1], [0], [0], [1], [0, 0, 1, 1], [], []>} : vector<1x32xbf16>, vector<32x128xbf16>, vector<1x128xf32> -> vector<1x128xf32>
    %26 = arith.addf %22, %25 : vector<1x128xf32>
    %27 = math.tanh %26 : vector<1x128xf32>
    %28 = arith.mulf %27, %8 : vector<1x128xf32>
    %29 = arith.addf %28, %11 : vector<1x128xf32>
    %30 = vector.extract_strided_slice %29 {offsets = [0, 0], sizes = [1, 32], strides = [1, 1]} : vector<1x128xf32> to vector<1x32xf32>
    %31 = vector.extract_strided_slice %29 {offsets = [0, 32], sizes = [1, 32], strides = [1, 1]} : vector<1x128xf32> to vector<1x32xf32>
    %32 = vector.extract_strided_slice %29 {offsets = [0, 64], sizes = [1, 32], strides = [1, 1]} : vector<1x128xf32> to vector<1x32xf32>
    %33 = vector.extract_strided_slice %29 {offsets = [0, 96], sizes = [1, 32], strides = [1, 1]} : vector<1x128xf32> to vector<1x32xf32>
    %34 = arith.mulf %31, %20 : vector<1x32xf32>
    %35 = arith.mulf %30, %32 : vector<1x32xf32>
    %36 = arith.addf %34, %35 : vector<1x32xf32>
    %37 = math.tanh %36 : vector<1x32xf32>
    %38 = arith.mulf %33, %37 : vector<1x32xf32>
    %39 = vector.extract_strided_slice %17 {offsets = [1, 0], sizes = [1, 128], strides = [1, 1]} : vector<8x128xf32> to vector<1x128xf32>
    %40 = arith.truncf %38 : vector<1x32xf32> to vector<1x32xbf16>
    %c0_16 = arith.constant 0 : index
    %c0_17 = arith.constant 0 : index
    %41 = vector.load %arg2[%c0_16, %c0_17] : memref<32x128xbf16, #tpu.memory_space<vmem>>, vector<32x128xbf16>
    %cst_18 = arith.constant dense<0.000000e+00> : vector<1x128xf32>
    %42 = tpu.matmul %40, %41, %cst_18 {dimension_numbers = #tpu.dot_dimension_numbers<[1], [0], [0], [1], [0, 0, 1, 1], [], []>} : vector<1x32xbf16>, vector<32x128xbf16>, vector<1x128xf32> -> vector<1x128xf32>
    %43 = arith.addf %39, %42 : vector<1x128xf32>
    %44 = math.tanh %43 : vector<1x128xf32>
    %45 = arith.mulf %44, %8 : vector<1x128xf32>
    %46 = arith.addf %45, %11 : vector<1x128xf32>
    %47 = vector.extract_strided_slice %46 {offsets = [0, 0], sizes = [1, 32], strides = [1, 1]} : vector<1x128xf32> to vector<1x32xf32>
    %48 = vector.extract_strided_slice %46 {offsets = [0, 32], sizes = [1, 32], strides = [1, 1]} : vector<1x128xf32> to vector<1x32xf32>
    %49 = vector.extract_strided_slice %46 {offsets = [0, 64], sizes = [1, 32], strides = [1, 1]} : vector<1x128xf32> to vector<1x32xf32>
    %50 = vector.extract_strided_slice %46 {offsets = [0, 96], sizes = [1, 32], strides = [1, 1]} : vector<1x128xf32> to vector<1x32xf32>
    %51 = arith.mulf %48, %36 : vector<1x32xf32>
    %52 = arith.mulf %47, %49 : vector<1x32xf32>
    %53 = arith.addf %51, %52 : vector<1x32xf32>
    %54 = math.tanh %53 : vector<1x32xf32>
    %55 = arith.mulf %50, %54 : vector<1x32xf32>
    %56 = tpu.concatenate %38, %19 in 1 : vector<1x32xf32>, vector<1x32xf32> -> vector<1x64xf32>
    %57 = arith.truncf %56 : vector<1x64xf32> to vector<1x64xbf16>
    %c0_19 = arith.constant 0 : index
    %c0_20 = arith.constant 0 : index
    %58 = vector.load %arg4[%c0_19, %c0_20] : memref<64x128xbf16, #tpu.memory_space<vmem>>, vector<64x128xbf16>
    %cst_21 = arith.constant dense<0.000000e+00> : vector<1x128xf32>
    %59 = tpu.matmul %57, %58, %cst_21 {dimension_numbers = #tpu.dot_dimension_numbers<[1], [0], [0], [1], [0, 0, 1, 1], [], []>} : vector<1x64xbf16>, vector<64x128xbf16>, vector<1x128xf32> -> vector<1x128xf32>
    %c0_22 = arith.constant 0 : index
    %c0_23 = arith.constant 0 : index
    %60 = vector.load %arg5[%c0_22, %c0_23] : memref<1x128xf32, #tpu.memory_space<vmem>>, vector<1x128xf32>
    %61 = arith.addf %59, %60 : vector<1x128xf32>
    %62 = math.tanh %61 : vector<1x128xf32>
    %63 = arith.mulf %62, %8 : vector<1x128xf32>
    %64 = arith.addf %63, %11 : vector<1x128xf32>
    %65 = vector.extract_strided_slice %64 {offsets = [0, 0], sizes = [1, 32], strides = [1, 1]} : vector<1x128xf32> to vector<1x32xf32>
    %66 = vector.extract_strided_slice %64 {offsets = [0, 32], sizes = [1, 32], strides = [1, 1]} : vector<1x128xf32> to vector<1x32xf32>
    %67 = vector.extract_strided_slice %64 {offsets = [0, 64], sizes = [1, 32], strides = [1, 1]} : vector<1x128xf32> to vector<1x32xf32>
    %68 = vector.extract_strided_slice %64 {offsets = [0, 96], sizes = [1, 32], strides = [1, 1]} : vector<1x128xf32> to vector<1x32xf32>
    %69 = arith.mulf %66, %21 : vector<1x32xf32>
    %70 = arith.mulf %65, %67 : vector<1x32xf32>
    %71 = arith.addf %69, %70 : vector<1x32xf32>
    %72 = math.tanh %71 : vector<1x32xf32>
    %73 = arith.mulf %68, %72 : vector<1x32xf32>
    %c0_24 = arith.constant 0 : index
    %c0_25 = arith.constant 0 : index
    %74 = vector.load %arg11[%c0_24, %c0_25] : memref<8x32xf32, #tpu.memory_space<vmem>>, vector<1x32xf32>
    tpu.vector_store %arg11[%c0_24, %c0_25], %73 {strides = array<i32>} : memref<8x32xf32, #tpu.memory_space<vmem>>, vector<1x32xf32>,
    %75 = vector.extract_strided_slice %17 {offsets = [2, 0], sizes = [1, 128], strides = [1, 1]} : vector<8x128xf32> to vector<1x128xf32>
    %76 = arith.truncf %55 : vector<1x32xf32> to vector<1x32xbf16>
    %c0_26 = arith.constant 0 : index
    %c0_27 = arith.constant 0 : index
    %77 = vector.load %arg2[%c0_26, %c0_27] : memref<32x128xbf16, #tpu.memory_space<vmem>>, vector<32x128xbf16>
    %cst_28 = arith.constant dense<0.000000e+00> : vector<1x128xf32>
    %78 = tpu.matmul %76, %77, %cst_28 {dimension_numbers = #tpu.dot_dimension_numbers<[1], [0], [0], [1], [0, 0, 1, 1], [], []>} : vector<1x32xbf16>, vector<32x128xbf16>, vector<1x128xf32> -> vector<1x128xf32>
    %79 = arith.addf %75, %78 : vector<1x128xf32>
    %80 = math.tanh %79 : vector<1x128xf32>
    %81 = arith.mulf %80, %8 : vector<1x128xf32>
    %82 = arith.addf %81, %11 : vector<1x128xf32>
    %83 = vector.extract_strided_slice %82 {offsets = [0, 0], sizes = [1, 32], strides = [1, 1]} : vector<1x128xf32> to vector<1x32xf32>
    %84 = vector.extract_strided_slice %82 {offsets = [0, 32], sizes = [1, 32], strides = [1, 1]} : vector<1x128xf32> to vector<1x32xf32>
    %85 = vector.extract_strided_slice %82 {offsets = [0, 64], sizes = [1, 32], strides = [1, 1]} : vector<1x128xf32> to vector<1x32xf32>
    %86 = vector.extract_strided_slice %82 {offsets = [0, 96], sizes = [1, 32], strides = [1, 1]} : vector<1x128xf32> to vector<1x32xf32>
    %87 = arith.mulf %84, %53 : vector<1x32xf32>
    %88 = arith.mulf %83, %85 : vector<1x32xf32>
    %89 = arith.addf %87, %88 : vector<1x32xf32>
    %90 = math.tanh %89 : vector<1x32xf32>
    %91 = arith.mulf %86, %90 : vector<1x32xf32>
    %92 = tpu.concatenate %55, %73 in 1 : vector<1x32xf32>, vector<1x32xf32> -> vector<1x64xf32>
    %93 = arith.truncf %92 : vector<1x64xf32> to vector<1x64xbf16>
    %c0_29 = arith.constant 0 : index
    %c0_30 = arith.constant 0 : index
    %94 = vector.load %arg4[%c0_29, %c0_30] : memref<64x128xbf16, #tpu.memory_space<vmem>>, vector<64x128xbf16>
    %cst_31 = arith.constant dense<0.000000e+00> : vector<1x128xf32>
    %95 = tpu.matmul %93, %94, %cst_31 {dimension_numbers = #tpu.dot_dimension_numbers<[1], [0], [0], [1], [0, 0, 1, 1], [], []>} : vector<1x64xbf16>, vector<64x128xbf16>, vector<1x128xf32> -> vector<1x128xf32>
    %c0_32 = arith.constant 0 : index
    %c0_33 = arith.constant 0 : index
    %96 = vector.load %arg5[%c0_32, %c0_33] : memref<1x128xf32, #tpu.memory_space<vmem>>, vector<1x128xf32>
    %97 = arith.addf %95, %96 : vector<1x128xf32>
    %98 = math.tanh %97 : vector<1x128xf32>
    %99 = arith.mulf %98, %8 : vector<1x128xf32>
    %100 = arith.addf %99, %11 : vector<1x128xf32>
    %101 = vector.extract_strided_slice %100 {offsets = [0, 0], sizes = [1, 32], strides = [1, 1]} : vector<1x128xf32> to vector<1x32xf32>
    %102 = vector.extract_strided_slice %100 {offsets = [0, 32], sizes = [1, 32], strides = [1, 1]} : vector<1x128xf32> to vector<1x32xf32>
    %103 = vector.extract_strided_slice %100 {offsets = [0, 64], sizes = [1, 32], strides = [1, 1]} : vector<1x128xf32> to vector<1x32xf32>
    %104 = vector.extract_strided_slice %100 {offsets = [0, 96], sizes = [1, 32], strides = [1, 1]} : vector<1x128xf32> to vector<1x32xf32>
    %105 = arith.mulf %102, %71 : vector<1x32xf32>
    %106 = arith.mulf %101, %103 : vector<1x32xf32>
    %107 = arith.addf %105, %106 : vector<1x32xf32>
    %108 = math.tanh %107 : vector<1x32xf32>
    %109 = arith.mulf %104, %108 : vector<1x32xf32>
    %c1 = arith.constant 1 : index
    %c0_34 = arith.constant 0 : index
    %110 = vector.load %arg11[%c1, %c0_34] : memref<8x32xf32, #tpu.memory_space<vmem>>, vector<1x32xf32>
    tpu.vector_store %arg11[%c1, %c0_34], %109 {strides = array<i32>} : memref<8x32xf32, #tpu.memory_space<vmem>>, vector<1x32xf32>,
    %111 = vector.extract_strided_slice %17 {offsets = [3, 0], sizes = [1, 128], strides = [1, 1]} : vector<8x128xf32> to vector<1x128xf32>
    %112 = arith.truncf %91 : vector<1x32xf32> to vector<1x32xbf16>
    %c0_35 = arith.constant 0 : index
    %c0_36 = arith.constant 0 : index
    %113 = vector.load %arg2[%c0_35, %c0_36] : memref<32x128xbf16, #tpu.memory_space<vmem>>, vector<32x128xbf16>
    %cst_37 = arith.constant dense<0.000000e+00> : vector<1x128xf32>
    %114 = tpu.matmul %112, %113, %cst_37 {dimension_numbers = #tpu.dot_dimension_numbers<[1], [0], [0], [1], [0, 0, 1, 1], [], []>} : vector<1x32xbf16>, vector<32x128xbf16>, vector<1x128xf32> -> vector<1x128xf32>
    %115 = arith.addf %111, %114 : vector<1x128xf32>
    %116 = math.tanh %115 : vector<1x128xf32>
    %117 = arith.mulf %116, %8 : vector<1x128xf32>
    %118 = arith.addf %117, %11 : vector<1x128xf32>
    %119 = vector.extract_strided_slice %118 {offsets = [0, 0], sizes = [1, 32], strides = [1, 1]} : vector<1x128xf32> to vector<1x32xf32>
    %120 = vector.extract_strided_slice %118 {offsets = [0, 32], sizes = [1, 32], strides = [1, 1]} : vector<1x128xf32> to vector<1x32xf32>
    %121 = vector.extract_strided_slice %118 {offsets = [0, 64], sizes = [1, 32], strides = [1, 1]} : vector<1x128xf32> to vector<1x32xf32>
    %122 = vector.extract_strided_slice %118 {offsets = [0, 96], sizes = [1, 32], strides = [1, 1]} : vector<1x128xf32> to vector<1x32xf32>
    %123 = arith.mulf %120, %89 : vector<1x32xf32>
    %124 = arith.mulf %119, %121 : vector<1x32xf32>
    %125 = arith.addf %123, %124 : vector<1x32xf32>
    %126 = math.tanh %125 : vector<1x32xf32>
    %127 = arith.mulf %122, %126 : vector<1x32xf32>
    %128 = tpu.concatenate %91, %109 in 1 : vector<1x32xf32>, vector<1x32xf32> -> vector<1x64xf32>
    %129 = arith.truncf %128 : vector<1x64xf32> to vector<1x64xbf16>
    %c0_38 = arith.constant 0 : index
    %c0_39 = arith.constant 0 : index
    %130 = vector.load %arg4[%c0_38, %c0_39] : memref<64x128xbf16, #tpu.memory_space<vmem>>, vector<64x128xbf16>
    %cst_40 = arith.constant dense<0.000000e+00> : vector<1x128xf32>
    %131 = tpu.matmul %129, %130, %cst_40 {dimension_numbers = #tpu.dot_dimension_numbers<[1], [0], [0], [1], [0, 0, 1, 1], [], []>} : vector<1x64xbf16>, vector<64x128xbf16>, vector<1x128xf32> -> vector<1x128xf32>
    %c0_41 = arith.constant 0 : index
    %c0_42 = arith.constant 0 : index
    %132 = vector.load %arg5[%c0_41, %c0_42] : memref<1x128xf32, #tpu.memory_space<vmem>>, vector<1x128xf32>
    %133 = arith.addf %131, %132 : vector<1x128xf32>
    %134 = math.tanh %133 : vector<1x128xf32>
    %135 = arith.mulf %134, %8 : vector<1x128xf32>
    %136 = arith.addf %135, %11 : vector<1x128xf32>
    %137 = vector.extract_strided_slice %136 {offsets = [0, 0], sizes = [1, 32], strides = [1, 1]} : vector<1x128xf32> to vector<1x32xf32>
    %138 = vector.extract_strided_slice %136 {offsets = [0, 32], sizes = [1, 32], strides = [1, 1]} : vector<1x128xf32> to vector<1x32xf32>
    %139 = vector.extract_strided_slice %136 {offsets = [0, 64], sizes = [1, 32], strides = [1, 1]} : vector<1x128xf32> to vector<1x32xf32>
    %140 = vector.extract_strided_slice %136 {offsets = [0, 96], sizes = [1, 32], strides = [1, 1]} : vector<1x128xf32> to vector<1x32xf32>
    %141 = arith.mulf %138, %107 : vector<1x32xf32>
    %142 = arith.mulf %137, %139 : vector<1x32xf32>
    %143 = arith.addf %141, %142 : vector<1x32xf32>
    %144 = math.tanh %143 : vector<1x32xf32>
    %145 = arith.mulf %140, %144 : vector<1x32xf32>
    %c2 = arith.constant 2 : index
    %c0_43 = arith.constant 0 : index
    %146 = vector.load %arg11[%c2, %c0_43] : memref<8x32xf32, #tpu.memory_space<vmem>>, vector<1x32xf32>
    tpu.vector_store %arg11[%c2, %c0_43], %145 {strides = array<i32>} : memref<8x32xf32, #tpu.memory_space<vmem>>, vector<1x32xf32>,
    %147 = vector.extract_strided_slice %17 {offsets = [4, 0], sizes = [1, 128], strides = [1, 1]} : vector<8x128xf32> to vector<1x128xf32>
    %148 = arith.truncf %127 : vector<1x32xf32> to vector<1x32xbf16>
    %c0_44 = arith.constant 0 : index
    %c0_45 = arith.constant 0 : index
    %149 = vector.load %arg2[%c0_44, %c0_45] : memref<32x128xbf16, #tpu.memory_space<vmem>>, vector<32x128xbf16>
    %cst_46 = arith.constant dense<0.000000e+00> : vector<1x128xf32>
    %150 = tpu.matmul %148, %149, %cst_46 {dimension_numbers = #tpu.dot_dimension_numbers<[1], [0], [0], [1], [0, 0, 1, 1], [], []>} : vector<1x32xbf16>, vector<32x128xbf16>, vector<1x128xf32> -> vector<1x128xf32>
    %151 = arith.addf %147, %150 : vector<1x128xf32>
    %152 = math.tanh %151 : vector<1x128xf32>
    %153 = arith.mulf %152, %8 : vector<1x128xf32>
    %154 = arith.addf %153, %11 : vector<1x128xf32>
    %155 = vector.extract_strided_slice %154 {offsets = [0, 0], sizes = [1, 32], strides = [1, 1]} : vector<1x128xf32> to vector<1x32xf32>
    %156 = vector.extract_strided_slice %154 {offsets = [0, 32], sizes = [1, 32], strides = [1, 1]} : vector<1x128xf32> to vector<1x32xf32>
    %157 = vector.extract_strided_slice %154 {offsets = [0, 64], sizes = [1, 32], strides = [1, 1]} : vector<1x128xf32> to vector<1x32xf32>
    %158 = vector.extract_strided_slice %154 {offsets = [0, 96], sizes = [1, 32], strides = [1, 1]} : vector<1x128xf32> to vector<1x32xf32>
    %159 = arith.mulf %156, %125 : vector<1x32xf32>
    %160 = arith.mulf %155, %157 : vector<1x32xf32>
    %161 = arith.addf %159, %160 : vector<1x32xf32>
    %162 = math.tanh %161 : vector<1x32xf32>
    %163 = arith.mulf %158, %162 : vector<1x32xf32>
    %164 = tpu.concatenate %127, %145 in 1 : vector<1x32xf32>, vector<1x32xf32> -> vector<1x64xf32>
    %165 = arith.truncf %164 : vector<1x64xf32> to vector<1x64xbf16>
    %c0_47 = arith.constant 0 : index
    %c0_48 = arith.constant 0 : index
    %166 = vector.load %arg4[%c0_47, %c0_48] : memref<64x128xbf16, #tpu.memory_space<vmem>>, vector<64x128xbf16>
    %cst_49 = arith.constant dense<0.000000e+00> : vector<1x128xf32>
    %167 = tpu.matmul %165, %166, %cst_49 {dimension_numbers = #tpu.dot_dimension_numbers<[1], [0], [0], [1], [0, 0, 1, 1], [], []>} : vector<1x64xbf16>, vector<64x128xbf16>, vector<1x128xf32> -> vector<1x128xf32>
    %c0_50 = arith.constant 0 : index
    %c0_51 = arith.constant 0 : index
    %168 = vector.load %arg5[%c0_50, %c0_51] : memref<1x128xf32, #tpu.memory_space<vmem>>, vector<1x128xf32>
    %169 = arith.addf %167, %168 : vector<1x128xf32>
    %170 = math.tanh %169 : vector<1x128xf32>
    %171 = arith.mulf %170, %8 : vector<1x128xf32>
    %172 = arith.addf %171, %11 : vector<1x128xf32>
    %173 = vector.extract_strided_slice %172 {offsets = [0, 0], sizes = [1, 32], strides = [1, 1]} : vector<1x128xf32> to vector<1x32xf32>
    %174 = vector.extract_strided_slice %172 {offsets = [0, 32], sizes = [1, 32], strides = [1, 1]} : vector<1x128xf32> to vector<1x32xf32>
    %175 = vector.extract_strided_slice %172 {offsets = [0, 64], sizes = [1, 32], strides = [1, 1]} : vector<1x128xf32> to vector<1x32xf32>
    %176 = vector.extract_strided_slice %172 {offsets = [0, 96], sizes = [1, 32], strides = [1, 1]} : vector<1x128xf32> to vector<1x32xf32>
    %177 = arith.mulf %174, %143 : vector<1x32xf32>
    %178 = arith.mulf %173, %175 : vector<1x32xf32>
    %179 = arith.addf %177, %178 : vector<1x32xf32>
    %180 = math.tanh %179 : vector<1x32xf32>
    %181 = arith.mulf %176, %180 : vector<1x32xf32>
    %c3 = arith.constant 3 : index
    %c0_52 = arith.constant 0 : index
    %182 = vector.load %arg11[%c3, %c0_52] : memref<8x32xf32, #tpu.memory_space<vmem>>, vector<1x32xf32>
    tpu.vector_store %arg11[%c3, %c0_52], %181 {strides = array<i32>} : memref<8x32xf32, #tpu.memory_space<vmem>>, vector<1x32xf32>,
    %183 = vector.extract_strided_slice %17 {offsets = [5, 0], sizes = [1, 128], strides = [1, 1]} : vector<8x128xf32> to vector<1x128xf32>
    %184 = arith.truncf %163 : vector<1x32xf32> to vector<1x32xbf16>
    %c0_53 = arith.constant 0 : index
    %c0_54 = arith.constant 0 : index
    %185 = vector.load %arg2[%c0_53, %c0_54] : memref<32x128xbf16, #tpu.memory_space<vmem>>, vector<32x128xbf16>
    %cst_55 = arith.constant dense<0.000000e+00> : vector<1x128xf32>
    %186 = tpu.matmul %184, %185, %cst_55 {dimension_numbers = #tpu.dot_dimension_numbers<[1], [0], [0], [1], [0, 0, 1, 1], [], []>} : vector<1x32xbf16>, vector<32x128xbf16>, vector<1x128xf32> -> vector<1x128xf32>
    %187 = arith.addf %183, %186 : vector<1x128xf32>
    %188 = math.tanh %187 : vector<1x128xf32>
    %189 = arith.mulf %188, %8 : vector<1x128xf32>
    %190 = arith.addf %189, %11 : vector<1x128xf32>
    %191 = vector.extract_strided_slice %190 {offsets = [0, 0], sizes = [1, 32], strides = [1, 1]} : vector<1x128xf32> to vector<1x32xf32>
    %192 = vector.extract_strided_slice %190 {offsets = [0, 32], sizes = [1, 32], strides = [1, 1]} : vector<1x128xf32> to vector<1x32xf32>
    %193 = vector.extract_strided_slice %190 {offsets = [0, 64], sizes = [1, 32], strides = [1, 1]} : vector<1x128xf32> to vector<1x32xf32>
    %194 = vector.extract_strided_slice %190 {offsets = [0, 96], sizes = [1, 32], strides = [1, 1]} : vector<1x128xf32> to vector<1x32xf32>
    %195 = arith.mulf %192, %161 : vector<1x32xf32>
    %196 = arith.mulf %191, %193 : vector<1x32xf32>
    %197 = arith.addf %195, %196 : vector<1x32xf32>
    %198 = math.tanh %197 : vector<1x32xf32>
    %199 = arith.mulf %194, %198 : vector<1x32xf32>
    %200 = tpu.concatenate %163, %181 in 1 : vector<1x32xf32>, vector<1x32xf32> -> vector<1x64xf32>
    %201 = arith.truncf %200 : vector<1x64xf32> to vector<1x64xbf16>
    %c0_56 = arith.constant 0 : index
    %c0_57 = arith.constant 0 : index
    %202 = vector.load %arg4[%c0_56, %c0_57] : memref<64x128xbf16, #tpu.memory_space<vmem>>, vector<64x128xbf16>
    %cst_58 = arith.constant dense<0.000000e+00> : vector<1x128xf32>
    %203 = tpu.matmul %201, %202, %cst_58 {dimension_numbers = #tpu.dot_dimension_numbers<[1], [0], [0], [1], [0, 0, 1, 1], [], []>} : vector<1x64xbf16>, vector<64x128xbf16>, vector<1x128xf32> -> vector<1x128xf32>
    %c0_59 = arith.constant 0 : index
    %c0_60 = arith.constant 0 : index
    %204 = vector.load %arg5[%c0_59, %c0_60] : memref<1x128xf32, #tpu.memory_space<vmem>>, vector<1x128xf32>
    %205 = arith.addf %203, %204 : vector<1x128xf32>
    %206 = math.tanh %205 : vector<1x128xf32>
    %207 = arith.mulf %206, %8 : vector<1x128xf32>
    %208 = arith.addf %207, %11 : vector<1x128xf32>
    %209 = vector.extract_strided_slice %208 {offsets = [0, 0], sizes = [1, 32], strides = [1, 1]} : vector<1x128xf32> to vector<1x32xf32>
    %210 = vector.extract_strided_slice %208 {offsets = [0, 32], sizes = [1, 32], strides = [1, 1]} : vector<1x128xf32> to vector<1x32xf32>
    %211 = vector.extract_strided_slice %208 {offsets = [0, 64], sizes = [1, 32], strides = [1, 1]} : vector<1x128xf32> to vector<1x32xf32>
    %212 = vector.extract_strided_slice %208 {offsets = [0, 96], sizes = [1, 32], strides = [1, 1]} : vector<1x128xf32> to vector<1x32xf32>
    %213 = arith.mulf %210, %179 : vector<1x32xf32>
    %214 = arith.mulf %209, %211 : vector<1x32xf32>
    %215 = arith.addf %213, %214 : vector<1x32xf32>
    %216 = math.tanh %215 : vector<1x32xf32>
    %217 = arith.mulf %212, %216 : vector<1x32xf32>
    %c4 = arith.constant 4 : index
    %c0_61 = arith.constant 0 : index
    %218 = vector.load %arg11[%c4, %c0_61] : memref<8x32xf32, #tpu.memory_space<vmem>>, vector<1x32xf32>
    tpu.vector_store %arg11[%c4, %c0_61], %217 {strides = array<i32>} : memref<8x32xf32, #tpu.memory_space<vmem>>, vector<1x32xf32>,
    %219 = vector.extract_strided_slice %17 {offsets = [6, 0], sizes = [1, 128], strides = [1, 1]} : vector<8x128xf32> to vector<1x128xf32>
    %220 = arith.truncf %199 : vector<1x32xf32> to vector<1x32xbf16>
    %c0_62 = arith.constant 0 : index
    %c0_63 = arith.constant 0 : index
    %221 = vector.load %arg2[%c0_62, %c0_63] : memref<32x128xbf16, #tpu.memory_space<vmem>>, vector<32x128xbf16>
    %cst_64 = arith.constant dense<0.000000e+00> : vector<1x128xf32>
    %222 = tpu.matmul %220, %221, %cst_64 {dimension_numbers = #tpu.dot_dimension_numbers<[1], [0], [0], [1], [0, 0, 1, 1], [], []>} : vector<1x32xbf16>, vector<32x128xbf16>, vector<1x128xf32> -> vector<1x128xf32>
    %223 = arith.addf %219, %222 : vector<1x128xf32>
    %224 = math.tanh %223 : vector<1x128xf32>
    %225 = arith.mulf %224, %8 : vector<1x128xf32>
    %226 = arith.addf %225, %11 : vector<1x128xf32>
    %227 = vector.extract_strided_slice %226 {offsets = [0, 0], sizes = [1, 32], strides = [1, 1]} : vector<1x128xf32> to vector<1x32xf32>
    %228 = vector.extract_strided_slice %226 {offsets = [0, 32], sizes = [1, 32], strides = [1, 1]} : vector<1x128xf32> to vector<1x32xf32>
    %229 = vector.extract_strided_slice %226 {offsets = [0, 64], sizes = [1, 32], strides = [1, 1]} : vector<1x128xf32> to vector<1x32xf32>
    %230 = vector.extract_strided_slice %226 {offsets = [0, 96], sizes = [1, 32], strides = [1, 1]} : vector<1x128xf32> to vector<1x32xf32>
    %231 = arith.mulf %228, %197 : vector<1x32xf32>
    %232 = arith.mulf %227, %229 : vector<1x32xf32>
    %233 = arith.addf %231, %232 : vector<1x32xf32>
    %234 = math.tanh %233 : vector<1x32xf32>
    %235 = arith.mulf %230, %234 : vector<1x32xf32>
    %236 = tpu.concatenate %199, %217 in 1 : vector<1x32xf32>, vector<1x32xf32> -> vector<1x64xf32>
    %237 = arith.truncf %236 : vector<1x64xf32> to vector<1x64xbf16>
    %c0_65 = arith.constant 0 : index
    %c0_66 = arith.constant 0 : index
    %238 = vector.load %arg4[%c0_65, %c0_66] : memref<64x128xbf16, #tpu.memory_space<vmem>>, vector<64x128xbf16>
    %cst_67 = arith.constant dense<0.000000e+00> : vector<1x128xf32>
    %239 = tpu.matmul %237, %238, %cst_67 {dimension_numbers = #tpu.dot_dimension_numbers<[1], [0], [0], [1], [0, 0, 1, 1], [], []>} : vector<1x64xbf16>, vector<64x128xbf16>, vector<1x128xf32> -> vector<1x128xf32>
    %c0_68 = arith.constant 0 : index
    %c0_69 = arith.constant 0 : index
    %240 = vector.load %arg5[%c0_68, %c0_69] : memref<1x128xf32, #tpu.memory_space<vmem>>, vector<1x128xf32>
    %241 = arith.addf %239, %240 : vector<1x128xf32>
    %242 = math.tanh %241 : vector<1x128xf32>
    %243 = arith.mulf %242, %8 : vector<1x128xf32>
    %244 = arith.addf %243, %11 : vector<1x128xf32>
    %245 = vector.extract_strided_slice %244 {offsets = [0, 0], sizes = [1, 32], strides = [1, 1]} : vector<1x128xf32> to vector<1x32xf32>
    %246 = vector.extract_strided_slice %244 {offsets = [0, 32], sizes = [1, 32], strides = [1, 1]} : vector<1x128xf32> to vector<1x32xf32>
    %247 = vector.extract_strided_slice %244 {offsets = [0, 64], sizes = [1, 32], strides = [1, 1]} : vector<1x128xf32> to vector<1x32xf32>
    %248 = vector.extract_strided_slice %244 {offsets = [0, 96], sizes = [1, 32], strides = [1, 1]} : vector<1x128xf32> to vector<1x32xf32>
    %249 = arith.mulf %246, %215 : vector<1x32xf32>
    %250 = arith.mulf %245, %247 : vector<1x32xf32>
    %251 = arith.addf %249, %250 : vector<1x32xf32>
    %252 = math.tanh %251 : vector<1x32xf32>
    %253 = arith.mulf %248, %252 : vector<1x32xf32>
    %c5 = arith.constant 5 : index
    %c0_70 = arith.constant 0 : index
    %254 = vector.load %arg11[%c5, %c0_70] : memref<8x32xf32, #tpu.memory_space<vmem>>, vector<1x32xf32>
    tpu.vector_store %arg11[%c5, %c0_70], %253 {strides = array<i32>} : memref<8x32xf32, #tpu.memory_space<vmem>>, vector<1x32xf32>,
    %255 = vector.extract_strided_slice %17 {offsets = [7, 0], sizes = [1, 128], strides = [1, 1]} : vector<8x128xf32> to vector<1x128xf32>
    %256 = arith.truncf %235 : vector<1x32xf32> to vector<1x32xbf16>
    %c0_71 = arith.constant 0 : index
    %c0_72 = arith.constant 0 : index
    %257 = vector.load %arg2[%c0_71, %c0_72] : memref<32x128xbf16, #tpu.memory_space<vmem>>, vector<32x128xbf16>
    %cst_73 = arith.constant dense<0.000000e+00> : vector<1x128xf32>
    %258 = tpu.matmul %256, %257, %cst_73 {dimension_numbers = #tpu.dot_dimension_numbers<[1], [0], [0], [1], [0, 0, 1, 1], [], []>} : vector<1x32xbf16>, vector<32x128xbf16>, vector<1x128xf32> -> vector<1x128xf32>
    %259 = arith.addf %255, %258 : vector<1x128xf32>
    %260 = math.tanh %259 : vector<1x128xf32>
    %261 = arith.mulf %260, %8 : vector<1x128xf32>
    %262 = arith.addf %261, %11 : vector<1x128xf32>
    %263 = vector.extract_strided_slice %262 {offsets = [0, 0], sizes = [1, 32], strides = [1, 1]} : vector<1x128xf32> to vector<1x32xf32>
    %264 = vector.extract_strided_slice %262 {offsets = [0, 32], sizes = [1, 32], strides = [1, 1]} : vector<1x128xf32> to vector<1x32xf32>
    %265 = vector.extract_strided_slice %262 {offsets = [0, 64], sizes = [1, 32], strides = [1, 1]} : vector<1x128xf32> to vector<1x32xf32>
    %266 = vector.extract_strided_slice %262 {offsets = [0, 96], sizes = [1, 32], strides = [1, 1]} : vector<1x128xf32> to vector<1x32xf32>
    %267 = arith.mulf %264, %233 : vector<1x32xf32>
    %268 = arith.mulf %263, %265 : vector<1x32xf32>
    %269 = arith.addf %267, %268 : vector<1x32xf32>
    %270 = math.tanh %269 : vector<1x32xf32>
    %271 = arith.mulf %266, %270 : vector<1x32xf32>
    %272 = tpu.concatenate %235, %253 in 1 : vector<1x32xf32>, vector<1x32xf32> -> vector<1x64xf32>
    %273 = arith.truncf %272 : vector<1x64xf32> to vector<1x64xbf16>
    %c0_74 = arith.constant 0 : index
    %c0_75 = arith.constant 0 : index
    %274 = vector.load %arg4[%c0_74, %c0_75] : memref<64x128xbf16, #tpu.memory_space<vmem>>, vector<64x128xbf16>
    %cst_76 = arith.constant dense<0.000000e+00> : vector<1x128xf32>
    %275 = tpu.matmul %273, %274, %cst_76 {dimension_numbers = #tpu.dot_dimension_numbers<[1], [0], [0], [1], [0, 0, 1, 1], [], []>} : vector<1x64xbf16>, vector<64x128xbf16>, vector<1x128xf32> -> vector<1x128xf32>
    %c0_77 = arith.constant 0 : index
    %c0_78 = arith.constant 0 : index
    %276 = vector.load %arg5[%c0_77, %c0_78] : memref<1x128xf32, #tpu.memory_space<vmem>>, vector<1x128xf32>
    %277 = arith.addf %275, %276 : vector<1x128xf32>
    %278 = math.tanh %277 : vector<1x128xf32>
    %279 = arith.mulf %278, %8 : vector<1x128xf32>
    %280 = arith.addf %279, %11 : vector<1x128xf32>
    %281 = vector.extract_strided_slice %280 {offsets = [0, 0], sizes = [1, 32], strides = [1, 1]} : vector<1x128xf32> to vector<1x32xf32>
    %282 = vector.extract_strided_slice %280 {offsets = [0, 32], sizes = [1, 32], strides = [1, 1]} : vector<1x128xf32> to vector<1x32xf32>
    %283 = vector.extract_strided_slice %280 {offsets = [0, 64], sizes = [1, 32], strides = [1, 1]} : vector<1x128xf32> to vector<1x32xf32>
    %284 = vector.extract_strided_slice %280 {offsets = [0, 96], sizes = [1, 32], strides = [1, 1]} : vector<1x128xf32> to vector<1x32xf32>
    %285 = arith.mulf %282, %251 : vector<1x32xf32>
    %286 = arith.mulf %281, %283 : vector<1x32xf32>
    %287 = arith.addf %285, %286 : vector<1x32xf32>
    %288 = math.tanh %287 : vector<1x32xf32>
    %289 = arith.mulf %284, %288 : vector<1x32xf32>
    %c6 = arith.constant 6 : index
    %c0_79 = arith.constant 0 : index
    %290 = vector.load %arg11[%c6, %c0_79] : memref<8x32xf32, #tpu.memory_space<vmem>>, vector<1x32xf32>
    tpu.vector_store %arg11[%c6, %c0_79], %289 {strides = array<i32>} : memref<8x32xf32, #tpu.memory_space<vmem>>, vector<1x32xf32>,
    %291 = tpu.concatenate %271, %289 in 1 : vector<1x32xf32>, vector<1x32xf32> -> vector<1x64xf32>
    %292 = arith.truncf %291 : vector<1x64xf32> to vector<1x64xbf16>
    %c0_80 = arith.constant 0 : index
    %c0_81 = arith.constant 0 : index
    %293 = vector.load %arg4[%c0_80, %c0_81] : memref<64x128xbf16, #tpu.memory_space<vmem>>, vector<64x128xbf16>
    %cst_82 = arith.constant dense<0.000000e+00> : vector<1x128xf32>
    %294 = tpu.matmul %292, %293, %cst_82 {dimension_numbers = #tpu.dot_dimension_numbers<[1], [0], [0], [1], [0, 0, 1, 1], [], []>} : vector<1x64xbf16>, vector<64x128xbf16>, vector<1x128xf32> -> vector<1x128xf32>
    %c0_83 = arith.constant 0 : index
    %c0_84 = arith.constant 0 : index
    %295 = vector.load %arg5[%c0_83, %c0_84] : memref<1x128xf32, #tpu.memory_space<vmem>>, vector<1x128xf32>
    %296 = arith.addf %294, %295 : vector<1x128xf32>
    %297 = math.tanh %296 : vector<1x128xf32>
    %298 = arith.mulf %297, %8 : vector<1x128xf32>
    %299 = arith.addf %298, %11 : vector<1x128xf32>
    %300 = vector.extract_strided_slice %299 {offsets = [0, 0], sizes = [1, 32], strides = [1, 1]} : vector<1x128xf32> to vector<1x32xf32>
    %301 = vector.extract_strided_slice %299 {offsets = [0, 32], sizes = [1, 32], strides = [1, 1]} : vector<1x128xf32> to vector<1x32xf32>
    %302 = vector.extract_strided_slice %299 {offsets = [0, 64], sizes = [1, 32], strides = [1, 1]} : vector<1x128xf32> to vector<1x32xf32>
    %303 = vector.extract_strided_slice %299 {offsets = [0, 96], sizes = [1, 32], strides = [1, 1]} : vector<1x128xf32> to vector<1x32xf32>
    %304 = arith.mulf %301, %287 : vector<1x32xf32>
    %305 = arith.mulf %300, %302 : vector<1x32xf32>
    %306 = arith.addf %304, %305 : vector<1x32xf32>
    %307 = math.tanh %306 : vector<1x32xf32>
    %308 = arith.mulf %303, %307 : vector<1x32xf32>
    %c7 = arith.constant 7 : index
    %c0_85 = arith.constant 0 : index
    %309 = vector.load %arg11[%c7, %c0_85] : memref<8x32xf32, #tpu.memory_space<vmem>>, vector<1x32xf32>
    tpu.vector_store %arg11[%c7, %c0_85], %308 {strides = array<i32>} : memref<8x32xf32, #tpu.memory_space<vmem>>, vector<1x32xf32>,
    %c0_86 = arith.constant 0 : index
    %c0_87 = arith.constant 0 : index
    %310 = vector.load %arg11[%c0_86, %c0_87] : memref<8x32xf32, #tpu.memory_space<vmem>>, vector<8x32xf32>
    %c0_88 = arith.constant 0 : index
    %c0_89 = arith.constant 0 : index
    %311 = vector.load %arg6[%c0_88, %c0_89] : memref<32x26xf32, #tpu.memory_space<vmem>>, vector<32x26xf32>
    %cst_90 = arith.constant dense<0.000000e+00> : vector<8x26xf32>
    %312 = tpu.matmul %310, %311, %cst_90 {dimension_numbers = #tpu.dot_dimension_numbers<[1], [0], [0], [1], [0, 0, 1, 1], [], []>} : vector<8x32xf32>, vector<32x26xf32>, vector<8x26xf32> -> vector<8x26xf32>
    %c0_91 = arith.constant 0 : index
    %c0_92 = arith.constant 0 : index
    %313 = vector.load %arg7[%c0_91, %c0_92] : memref<1x26xf32, #tpu.memory_space<vmem>>, vector<1x26xf32>
    %314 = vector.broadcast %313 : vector<1x26xf32> to vector<8x26xf32>
    %315 = arith.addf %312, %314 : vector<8x26xf32>
    %316 = math.tanh %315 : vector<8x26xf32>
    %c0_93 = arith.constant 0 : index
    %c0_94 = arith.constant 0 : index
    %317 = vector.load %arg8[%c0_93, %c0_94] : memref<26x2xf32, #tpu.memory_space<vmem>>, vector<26x2xf32>
    %cst_95 = arith.constant dense<0.000000e+00> : vector<8x2xf32>
    %318 = tpu.matmul %316, %317, %cst_95 {dimension_numbers = #tpu.dot_dimension_numbers<[1], [0], [0], [1], [0, 0, 1, 1], [], []>} : vector<8x26xf32>, vector<26x2xf32>, vector<8x2xf32> -> vector<8x2xf32>
    %c0_96 = arith.constant 0 : index
    %c0_97 = arith.constant 0 : index
    %319 = vector.load %arg9[%c0_96, %c0_97] : memref<1x2xf32, #tpu.memory_space<vmem>>, vector<1x2xf32>
    %320 = vector.broadcast %319 : vector<1x2xf32> to vector<8x2xf32>
    %321 = arith.addf %318, %320 : vector<8x2xf32>
    %cst_98 = arith.constant dense<0xFF800000> : vector<8xf32>
    %322 = vector.multi_reduction <maximumf>, %321, %cst_98 [1] : vector<8x2xf32> to vector<8xf32>
    %323 = vector.shape_cast %322 : vector<8xf32> to vector<8x1xf32>
    %324 = vector.broadcast %323 : vector<8x1xf32> to vector<8x2xf32>
    %325 = arith.subf %321, %324 : vector<8x2xf32>
    %326 = math.exp %325 : vector<8x2xf32>
    %cst_99 = arith.constant dense<0.000000e+00> : vector<8xf32>
    %327 = vector.multi_reduction <add>, %326, %cst_99 [1] : vector<8x2xf32> to vector<8xf32>
    %328 = vector.shape_cast %327 : vector<8xf32> to vector<8x1xf32>
    %329 = vector.broadcast %328 : vector<8x1xf32> to vector<8x2xf32>
    %330 = arith.divf %326, %329 : vector<8x2xf32>
    %c0_100 = arith.constant 0 : index
    %c0_101 = arith.constant 0 : index
    %331 = vector.load %arg10[%c0_100, %c0_101] : memref<8x2xf32, #tpu.memory_space<vmem>>, vector<8x2xf32>
    tpu.vector_store %arg10[%c0_100, %c0_101], %330 {strides = array<i32>} : memref<8x2xf32, #tpu.memory_space<vmem>>, vector<8x2xf32>,
    return
  }
}

</mosaic_0001>

<bundles_post_ra>
// kernel: tpu_custom_call.1
= control target key start
LH: loop header
LB: loop body
LE: loop exit
PB: predicated region body
PF: predicated region fallthrough
CT: control target
= control target key end

     0   :  { %15 = vsyncpa [#allocation4], 0  ;;  %s2304_s0 = inlined_call_operand.hbm [shape: f32[8,16], index: 0, kind: input, shape index: {}]   ;;  %s2305_s1 = inlined_call_operand.hbm [shape: f32[16,128], index: 1, kind: input, shape index: {}]   ;;  %s2306_s2 = inlined_call_operand.hbm [shape: bf16[32,128], index: 2, kind: input, shape index: {}]   ;;  %s2307_s3 = inlined_call_operand.vmem [shape: f32[1,128], index: 3, kind: input, shape index: {}]   ;;  %s2308_s4 = inlined_call_operand.vmem [shape: bf16[64,128], index: 4, kind: input, shape index: {}]   ;;  %s2309_s5 = inlined_call_operand.vmem [shape: f32[1,128], index: 5, kind: input, shape index: {}]   ;;  %s2310_s6 = inlined_call_operand.hbm [shape: f32[32,26], index: 6, kind: input, shape index: {}]   ;;  %s2311_s7 = inlined_call_operand.vmem [shape: f32[1,26], index: 7, kind: input, shape index: {}]   ;;  %s2312_s8 = inlined_call_operand.vmem [shape: f32[26,2], index: 8, kind: input, shape index: {}]   ;;  %s2313_s9 = inlined_call_operand.vmem [shape: f32[1,2], index: 9, kind: input, shape index: {}]   ;;  %s2314_s10 = inlined_call_operand.vmem [shape: f32[8,2], index: 10, kind: output, shape index: {}]  }
   0x1   :  { %16 = vsyncpa [#allocation6], 0  ;;  %s33_s15 = sshll.u32 %s2305_s1, 4  ;;  %s34_s15 = int_to_ptr.hbm [resolvable:$true] %s33_s15 }
   0x2   :  { %17 = vsyncpa [#allocation9], 0  ;;  %s1853_s16 = smov [#allocation5]   ;;  %s23_s20 = sshll.u32 %s2304_s0, 4  ;;  %s24_s20 = int_to_ptr.hbm [resolvable:$true] %s23_s20 }
   0x3   :  { %s35_s17 = sshll.u32 %s1853_s16, 4  ;;  %s1854_s21 = smov 128   ;;  %s36_s17 = int_to_ptr.vmem [resolvable:$true] %s35_s17 }
   0x4   :  { %s1855_s22 = smov 8   ;;  %s1856_s23 = smov [#allocation3]  }
   0x5   :  { %41 = dma.hbm_to_vmem [thread:$0]  %s34_s15, 256, %s36_s17, [#allocation6], %s1854_s21, %s1854_s21, %s1855_s22  }
   0x6   :  { %s25_s24 = sshll.u32 %s1856_s23, 4  ;;  %s46_s27 = sshll.u32 %s2306_s2, 4  ;;  %s26_s24 = int_to_ptr.vmem [resolvable:$true] %s25_s24  ;;  %s47_s27 = int_to_ptr.hbm [resolvable:$true] %s46_s27 }
   0x7   :  { %28 = dma.hbm_to_vmem [thread:$0]  %s24_s20, 128, %s26_s24, [#allocation4]  }
   0x8   :  { %s1857_s1 = smov [#allocation7]   ;;  %s65_s0 = sshll.u32 %s2310_s6, 4  ;;  %s66_s0 = int_to_ptr.hbm [resolvable:$true] %s65_s0 }
   0x9   :  { %s48_s28 = sshll.u32 %s1857_s1, 4  ;;  %s1858_s11 = smov 64   ;;  %s49_s28 = int_to_ptr.vmem [resolvable:$true] %s48_s28 }
   0xa   :  { %s1859_s12 = smov 4   ;;  %s1860_s13 = smov [#allocation8]  }
   0xb   :  { %54 = dma.hbm_to_vmem [thread:$0]  %s47_s27, 256, %s49_s28, [#allocation6], %s1858_s11, %s1858_s11, %s1859_s12  }
   0xc   :  { %s67_s14 = sshll.u32 %s1860_s13, 4  ;;  %s68_s14 = int_to_ptr.vmem [resolvable:$true] %s67_s14 }
   0xd   :  { %73 = dma.hbm_to_vmem [thread:$0]  %s66_s0, 512, %s68_s14, [#allocation9], %s1854_s21, %s1854_s21, %s1855_s22  }
   0xe   :  { %1847 = dma.done.wait [#allocation4], 128  }
   0xf   :  { %1848 = vsyncadd [#allocation4], 4294967168 }
  0x10   :  { %1849 = dma.done.wait [#allocation6], 512  }
  0x11   :  { %1850 = vsyncadd [#allocation6], 4294966784 }
  0x12   :  { %1851 = dma.done.wait [#allocation9], 512  }
  0x13   :  { %1852 = vsyncadd [#allocation9], 4294966784  ;;  %v1622_v0 = vld [vmem:[#allocation7 + $0x8] sm:$0xff]  ;;  %v106_v1 = vld [vmem:[#allocation5 + $0x8] sm:$0xff]  ;;  %vm111_vm0 = vcmask 130048   ;;  %v1861_v5 = vmov 0   ;;  %v97_v7 = vlaneseq }
  0x14   :  { %v105_v2 = vld [vmem:[#allocation5] sm:$0xff]  ;;  %129 = vmatpush.msra.mxu0 %v106_v1  ;;  %v104_v3 = vld [vmem:[#allocation3] sm:$0xff]  ;;  %161 = vmatpush.bf16.msra.mxu1 %v1622_v0  ;;  %v1621_v4 = vld [vmem:[#allocation7] sm:$0xff]  ;;  %v1862_v13 = vmov 0.5   ;;  %vm151_vm4 = vcmask 261120   ;;  %vm275_vm5 = vcmask 523264  }
  0x15   :  { %202 = vmatpush.bf16.msra.mxu2 %v1622_v0  ;;  %v1678_v6 = vld [vmem:[%s2307_s3] ss:$0 sm:$0xff]  ;;  %v98_v10 = vand.u32 127, %v97_v7  ;;  %s1863_s3 = smov 32   ;;  %v1626_v26 = vld [vmem:[%s2308_s4 + $0x18] sm:$0xff]  ;;  %v1625_v27 = vld [vmem:[%s2308_s4 + $0x10] sm:$0xff] }
  0x16   :  { %130 = vmatpush.msra.mxu0 %v105_v2  ;;  %283 = vmatpush.bf16.msra.mxu3 %v1626_v26  ;;  %v1624_v28 = vld [vmem:[%s2308_s4 + $0x8] sm:$0xff]  ;;  %v1623_v32 = vld [vmem:[%s2308_s4] sm:$0xff]  ;;  %vm316_vm6 = vcmask 253952   ;;  %vm1361_vm7 = vcmask 1041408   ;;  %vm1357_vm8 = vcmask 211968   ;;  %vm1385_vm9 = vcmask 15360  }
  0x17   :  { %1418 = vmatmul.msk.f32.vlgmr.msra.gmra.mxu0 %vm111_vm0, %v104_v3  ;;  %vm99_vm1 = vcmp.ge.s32.totalorder %v98_v10, 64  ;;  %vm100_vm2 = vcmp.lt.s32.totalorder %v98_v10, 96  ;;  %v250_v37 = vld [vmem:[%s2309_s5] sm:$0x1]  ;;  %v1628_v1 = vld [vmem:[#allocation7 + $0x8] sm:$0xff]  ;;  %v1632_v10 = vld [vmem:[%s2308_s4 + $0x18] sm:$0xff] }
  0x18   :  { %162 = vmatpush.bf16.msra.mxu1 %v1621_v4  ;;  %vm101_vm3 = vmand %vm99_vm1, %vm100_vm2  ;;  %349 = vmatpush.bf16.msrb.mxu0 %v1628_v1 }
  0x19   :  { %203 = vmatpush.bf16.msra.mxu2 %v1621_v4  ;;  %v1939_v14 = vsel %vm101_vm3, 1.0, %v1862_v13  ;;  %v1941_v17 = vsel %vm101_vm3, 0.0, %v1862_v13  ;;  %v1629_v13 = vld [vmem:[%s2308_s4] sm:$0xff] }
  0x1a   :  { %284 = vmatpush.bf16.msra.mxu3 %v1625_v27 }
  0x1b   :  { %163 = vmatmul.bf16.vlgmr.msra.gmra.mxu1 %v1861_v5 }
  0x1c   :  { %436 = vmatpush.bf16.msrb.mxu1 %v1632_v10 }
  0x1e   :  { %285 = vmatpush.bf16.msra.mxu3 %v1624_v28 }
  0x22   :  { %286 = vmatpush.bf16.msra.mxu3 %v1623_v32 }
  0x94   :  { %v132_v8 = vpop.f32.mrf.mxu0 }
  0x95   :  { %v1936_v9 = vadd.f32 %v1678_v6, %v132_v8  ;;  %v1627_v8 = vld [vmem:[#allocation7] sm:$0xff] }
  0x96   :  { %350 = vmatpush.bf16.msrb.mxu0 %v1627_v8 }
  0x98   :  { %v164_v11 = vpop.f32.mrf.mxu1 }
  0x99   :  { %v168_v12 = vadd.f32 %v164_v11, %v1936_v9  ;;  %v1631_v11 = vld [vmem:[%s2308_s4 + $0x10] sm:$0xff] }
  0x9a   :  { %437 = vmatpush.bf16.msrb.mxu1 %v1631_v11 }
  0x9b   :  { %1681 = vtanh.f32 %v168_v12  ;;  %v1630_v12 = vld [vmem:[%s2308_s4 + $0x8] sm:$0xff] }
  0x9e   :  { %438 = vmatpush.bf16.msrb.mxu1 %v1630_v12 }
  0xa0   :  { %v166_v15 = vpop.f32.mrf.mxu1 }
  0xa1   :  { %v1682_v16 = vpop.eup %1681 }
  0xa2   :  { %v170_v18 = vmul.f32 %v1682_v16, %v1939_v14  ;;  %439 = vmatpush.bf16.msrb.mxu1 %v1629_v13  ;;  %v552_v13 = vld [vmem:[%s2309_s5] sm:$0x1] }
  0xa4   :  { %v171_v19 = vadd.f32 %v170_v18, %v1941_v17 }
  0xa6   :  { %174 = vrot.lane.b32.xlu0 %v171_v19, %s1858_s11  ;;  %v172_v22 = vmul.f32 0.0, %v171_v19 }
 0x118   :  { %v175_v20 = vpop.permute.xlu0 %174 }
 0x119   :  { %v177_v21 = vmul.f32 %v175_v20, %v171_v19 }
 0x11b   :  { %179 = vrot.lane.b32.xlu0 %v177_v21, %s1863_s3 }
 0x18d   :  { %v180_v23 = vpop.permute.xlu0 %179 }
 0x18e   :  { %v182_v24 = vadd.f32 %v180_v23, %v172_v22 }
 0x190   :  { %1683 = vtanh.f32 %v182_v24  ;;  %v217_v59 = vrot.slane %v182_v24, 7 }
 0x196   :  { %v1684_v25 = vpop.eup %1683 }
 0x197   :  { %185 = vrot.lane.b32.xlu1 %v1684_v25, %s1858_s11 }
 0x209   :  { %v186_v29 = vpop.permute.xlu1 %185 }
 0x20a   :  { %v188_v30 = vmul.f32 %v186_v29, %v171_v19  ;;  %v401_v29 = vld [vmem:[%s2309_s5] sm:$0x1] }
 0x20c   :  { %v189_v31 = vpack.c.bf16 %v188_v30, %v188_v30  ;;  %237 = vrot.lane.b32.xlu2 %v188_v30, %s1863_s3 }
 0x20e   :  { %191 = vrot.lane.b32.xlu1 %v189_v31, %s1863_s3 }
 0x266   :  { %v238_v33 = vpop.permute.xlu2 %237 }
 0x267   :  { %v240_v34 = vsel %vm151_vm4, %v238_v33, 0.0 }
 0x268   :  { %v241_v35 = vpack.c.bf16 %v240_v34, %v240_v34 }
 0x26a   :  { %1444 = vmatmul.msk.bf16.vlgmr.msra.gmra.mxu3 %vm275_vm5, %v241_v35 }
 0x280   :  { %v192_v36 = vpop.permute.xlu1 %191 }
 0x281   :  { %1427 = vmatmul.msk.bf16.vlgmr.msra.gmra.mxu2 %vm151_vm4, %v192_v36 }
 0x2ed   :  { %v288_v38 = vpop.f32.mrf.mxu3 }
 0x2ee   :  { %v289_v39 = vadd.f32 %v288_v38, %v250_v37 }
 0x2f0   :  { %1685 = vtanh.f32 %v289_v39 }
 0x2f5   :  { %v290_v40 = vpop.f32.mrf.mxu3 }
 0x2f6   :  { %v1686_v41 = vpop.eup %1685 }
 0x2f7   :  { %v293_v42 = vmul.f32 %v1686_v41, %v1939_v14 }
 0x2f9   :  { %v294_v43 = vadd.f32 %v293_v42, %v1941_v17 }
 0x2fb   :  { %297 = vrot.lane.b32.xlu0 %v294_v43, %s1858_s11  ;;  %v295_v55 = vmul.f32 0.0, %v294_v43 }
 0x304   :  { %v205_v44 = vpop.f32.mrf.mxu2 }
 0x305   :  { %v210_v45 = vrot.slane %v205_v44, 7 }
 0x307   :  { %v212_v46 = vadd.f32 %v210_v45, %v1936_v9 }
 0x309   :  { %1687 = vtanh.f32 %v212_v46 }
 0x30c   :  { %v207_v47 = vpop.f32.mrf.mxu2 }
 0x30f   :  { %v1688_v48 = vpop.eup %1687 }
 0x310   :  { %v214_v49 = vmul.f32 %v1688_v48, %v1939_v14 }
 0x312   :  { %v215_v50 = vadd.f32 %v214_v49, %v1941_v17  ;;  %v1634_v49 = vld [vmem:[#allocation7 + $0x8] sm:$0xff] }
 0x313   :  { %500 = vmatpush.bf16.msrb.mxu2 %v1634_v49  ;;  %v1641_v49 = vld [vmem:[%s2308_s4] sm:$0xff] }
 0x314   :  { %221 = vrot.lane.b32.xlu2 %v215_v50, %s1858_s11  ;;  %v219_v60 = vmul.f32 %v217_v59, %v215_v50  ;;  %v1637_v59 = vld [vmem:[%s2308_s4 + $0x10] sm:$0xff] }
 0x36d   :  { %v298_v51 = vpop.permute.xlu0 %297 }
 0x36e   :  { %v300_v52 = vmul.f32 %v298_v51, %v294_v43  ;;  %v222_v53 = vpop.permute.xlu2 %221 }
 0x36f   :  { %v224_v54 = vmul.f32 %v222_v53, %v215_v50 }
 0x370   :  { %302 = vrot.lane.b32.xlu2 %v300_v52, %s1863_s3 }
 0x371   :  { %226 = vrot.lane.b32.xlu1 %v224_v54, %s1863_s3 }
 0x3ca   :  { %v303_v56 = vpop.permute.xlu2 %302 }
 0x3cb   :  { %v1977_v57 = vadd.f32 %v303_v56, %v295_v55 }
 0x3cd   :  { %1689 = vtanh.f32 %v1977_v57 }
 0x3d3   :  { %v1690_v58 = vpop.eup %1689 }
 0x3d4   :  { %308 = vrot.lane.b32.xlu1 %v1690_v58, %s1858_s11  ;;  %v1638_v58 = vld [vmem:[%s2308_s4 + $0x18] sm:$0xff] }
 0x3d5   :  { %586 = vmatpush.bf16.msra.mxu0 %v1638_v58 }
 0x3d9   :  { %587 = vmatpush.bf16.msra.mxu0 %v1637_v59 }
 0x3e3   :  { %v227_v61 = vpop.permute.xlu1 %226 }
 0x3e4   :  { %v229_v62 = vadd.f32 %v227_v61, %v219_v60  ;;  %v1636_v60 = vld [vmem:[%s2308_s4 + $0x8] sm:$0xff] }
 0x3e5   :  { %588 = vmatpush.bf16.msra.mxu0 %v1636_v60 }
 0x3e6   :  { %1691 = vtanh.f32 %v229_v62  ;;  %v364_v40 = vrot.slane %v229_v62, 7  ;;  %v1635_v62 = vld [vmem:[%s2308_s4] sm:$0xff] }
 0x3e9   :  { %589 = vmatpush.bf16.msra.mxu0 %v1635_v62 }
 0x3ec   :  { %v1692_v63 = vpop.eup %1691 }
 0x3ed   :  { %232 = vrot.lane.b32.xlu0 %v1692_v63, %s1858_s11 }
 0x446   :  { %v309_v0 = vpop.permute.xlu1 %308 }
 0x447   :  { %v1982_v2 = vmul.f32 %v309_v0, %v294_v43 }
 0x449   :  { %v387_v3 = vrot.slane %v1982_v2, 7 }
 0x44b   :  { %388 = vrot.lane.b32.xlu1 %v387_v3, %s1858_s11 }
 0x45f   :  { %v233_v4 = vpop.permute.xlu0 %232 }
 0x460   :  { %v235_v5 = vmul.f32 %v233_v4, %v215_v50  ;;  %v1633_v50 = vld [vmem:[#allocation7] sm:$0xff] }
 0x461   :  { %501 = vmatpush.bf16.msrb.mxu2 %v1633_v50 }
 0x462   :  { %v318_v6 = vpack.c.bf16 %v235_v5, %v235_v5  ;;  %384 = vrot.lane.b32.xlu0 %v235_v5, %s1863_s3 }
 0x464   :  { %v324_v7 = vshrl.u32 %v318_v6, 16 }
 0x466   :  { %326 = vrot.lane.b32.xlu2 %v324_v7, %s1863_s3 }
 0x4bd   :  { %v389_v16 = vpop.permute.xlu1 %388 }
 0x4c0   :  { %v327_v15 = vpop.permute.xlu2 %326 }
 0x4c1   :  { %1453 = vmatmul.msk.bf16.vlgmr.msrb.gmra.mxu0 %vm151_vm4, %v327_v15 }
 0x4d4   :  { %v385_v18 = vpop.permute.xlu0 %384 }
 0x4d5   :  { %v391_v19 = vsel %vm151_vm4, %v385_v18, %v389_v16 }
 0x4d6   :  { %v392_v20 = vpack.c.bf16 %v391_v19, %v391_v19 }
 0x4d8   :  { %v403_v21 = vshrl.u32 %v392_v20, 16 }
 0x4da   :  { %1470 = vmatmul.msk.bf16.vlgmr.msrb.gmra.mxu1 %vm275_vm5, %v403_v21 }
 0x53e   :  { %v352_v22 = vpop.f32.mrf.mxu0 }
 0x53f   :  { %v357_v23 = vrot.slane %v352_v22, 6 }
 0x541   :  { %v359_v24 = vadd.f32 %v357_v23, %v1936_v9 }
 0x543   :  { %1693 = vtanh.f32 %v359_v24 }
 0x546   :  { %v354_v25 = vpop.f32.mrf.mxu0 }
 0x549   :  { %v1694_v26 = vpop.eup %1693 }
 0x54a   :  { %v361_v27 = vmul.f32 %v1694_v26, %v1939_v14 }
 0x54c   :  { %v362_v28 = vadd.f32 %v361_v27, %v1941_v17 }
 0x54e   :  { %368 = vrot.lane.b32.xlu2 %v362_v28, %s1858_s11  ;;  %v366_v41 = vmul.f32 %v364_v40, %v362_v28  ;;  %v1640_v40 = vld [vmem:[#allocation7 + $0x8] sm:$0xff] }
 0x54f   :  { %652 = vmatpush.bf16.msrb.mxu3 %v1640_v40 }
 0x557   :  { %v441_v30 = vpop.f32.mrf.mxu1 }
 0x558   :  { %v442_v31 = vadd.f32 %v441_v30, %v401_v29 }
 0x55a   :  { %1695 = vtanh.f32 %v442_v31 }
 0x55f   :  { %v443_v32 = vpop.f32.mrf.mxu1 }
 0x560   :  { %v1696_v33 = vpop.eup %1695 }
 0x561   :  { %v446_v34 = vmul.f32 %v1696_v33, %v1939_v14 }
 0x563   :  { %v447_v35 = vadd.f32 %v446_v34, %v1941_v17 }
 0x565   :  { %450 = vrot.lane.b32.xlu0 %v447_v35, %s1858_s11  ;;  %v448_v45 = vmul.f32 %v447_v35, %v1977_v57 }
 0x5a8   :  { %v369_v36 = vpop.permute.xlu2 %368 }
 0x5a9   :  { %v371_v37 = vmul.f32 %v369_v36, %v362_v28 }
 0x5ab   :  { %373 = vrot.lane.b32.xlu1 %v371_v37, %s1863_s3 }
 0x5d7   :  { %v451_v38 = vpop.permute.xlu0 %450 }
 0x5d8   :  { %v453_v39 = vmul.f32 %v451_v38, %v447_v35 }
 0x5da   :  { %455 = vrot.lane.b32.xlu2 %v453_v39, %s1863_s3 }
 0x61d   :  { %v374_v42 = vpop.permute.xlu1 %373 }
 0x61e   :  { %v2015_v43 = vadd.f32 %v374_v42, %v366_v41  ;;  %v1639_v41 = vld [vmem:[#allocation7] sm:$0xff] }
 0x61f   :  { %653 = vmatpush.bf16.msrb.mxu3 %v1639_v41 }
 0x620   :  { %1697 = vtanh.f32 %v2015_v43  ;;  %v515_v26 = vrot.slane %v2015_v43, 7 }
 0x626   :  { %v1698_v44 = vpop.eup %1697 }
 0x627   :  { %379 = vrot.lane.b32.xlu0 %v1698_v44, %s1858_s11 }
 0x634   :  { %v456_v46 = vpop.permute.xlu2 %455 }
 0x635   :  { %v2020_v47 = vadd.f32 %v456_v46, %v448_v45  ;;  %v1644_v45 = vld [vmem:[%s2308_s4 + $0x18] sm:$0xff]  ;;  %v1643_v46 = vld [vmem:[%s2308_s4 + $0x10] sm:$0xff] }
 0x636   :  { %740 = vmatpush.bf16.msra.mxu1 %v1644_v45 }
 0x637   :  { %1699 = vtanh.f32 %v2020_v47 }
 0x63a   :  { %741 = vmatpush.bf16.msra.mxu1 %v1643_v46 }
 0x63d   :  { %v1700_v48 = vpop.eup %1699 }
 0x63e   :  { %461 = vrot.lane.b32.xlu1 %v1700_v48, %s1858_s11 }
 0x699   :  { %v380_v51 = vpop.permute.xlu0 %379 }
 0x69a   :  { %v382_v52 = vmul.f32 %v380_v51, %v362_v28 }
 0x69c   :  { %v470_v53 = vpack.c.bf16 %v382_v52, %v382_v52  ;;  %535 = vrot.lane.b32.xlu0 %v382_v52, %s1863_s3 }
 0x69e   :  { %v476_v54 = vrot.slane %v470_v53, 1 }
 0x6a0   :  { %477 = vrot.lane.b32.xlu2 %v476_v54, %s1863_s3 }
 0x6b0   :  { %v462_v55 = vpop.permute.xlu1 %461 }
 0x6b1   :  { %v2026_v56 = vmul.f32 %v462_v55, %v447_v35 }
 0x6b3   :  { %v538_v57 = vrot.slane %v2026_v56, 6 }
 0x6b5   :  { %539 = vrot.lane.b32.xlu1 %v538_v57, %s1858_s11 }
 0x6fa   :  { %v478_v61 = vpop.permute.xlu2 %477 }
 0x6fb   :  { %1479 = vmatmul.msk.bf16.vlgmr.msrb.gmra.mxu2 %vm151_vm4, %v478_v61 }
 0x70e   :  { %v536_v63 = vpop.permute.xlu0 %535 }
 0x727   :  { %v540_v0 = vpop.permute.xlu1 %539 }
 0x728   :  { %v542_v1 = vsel %vm151_vm4, %v536_v63, %v540_v0  ;;  %v704_v0 = vld [vmem:[%s2309_s5] sm:$0x1] }
 0x729   :  { %v543_v3 = vpack.c.bf16 %v542_v1, %v542_v1 }
 0x72b   :  { %v554_v4 = vrot.slane %v543_v3, 1 }
 0x72d   :  { %1496 = vmatmul.msk.bf16.vlgmr.msra.gmra.mxu0 %vm275_vm5, %v554_v4 }
 0x77e   :  { %v503_v5 = vpop.f32.mrf.mxu2 }
 0x77f   :  { %v508_v6 = vrot.slane %v503_v5, 5 }
 0x781   :  { %v510_v7 = vadd.f32 %v508_v6, %v1936_v9 }
 0x783   :  { %1701 = vtanh.f32 %v510_v7 }
 0x786   :  { %v505_v8 = vpop.f32.mrf.mxu2 }
 0x789   :  { %v1702_v10 = vpop.eup %1701 }
 0x78a   :  { %v512_v11 = vmul.f32 %v1702_v10, %v1939_v14 }
 0x78c   :  { %v513_v12 = vadd.f32 %v512_v11, %v1941_v17 }
 0x78e   :  { %519 = vrot.lane.b32.xlu2 %v513_v12, %s1858_s11  ;;  %v517_v27 = vmul.f32 %v515_v26, %v513_v12 }
 0x7aa   :  { %v591_v15 = vpop.f32.mrf.mxu0 }
 0x7ab   :  { %v592_v16 = vadd.f32 %v591_v15, %v552_v13 }
 0x7ad   :  { %1703 = vtanh.f32 %v592_v16 }
 0x7b2   :  { %v593_v18 = vpop.f32.mrf.mxu0 }
 0x7b3   :  { %v1704_v19 = vpop.eup %1703 }
 0x7b4   :  { %v596_v20 = vmul.f32 %v1704_v19, %v1939_v14 }
 0x7b6   :  { %v597_v21 = vadd.f32 %v596_v20, %v1941_v17 }
 0x7b8   :  { %600 = vrot.lane.b32.xlu0 %v597_v21, %s1858_s11  ;;  %v598_v31 = vmul.f32 %v597_v21, %v2020_v47  ;;  %v1642_v47 = vld [vmem:[%s2308_s4 + $0x8] sm:$0xff] }
 0x7b9   :  { %742 = vmatpush.bf16.msra.mxu1 %v1642_v47 }
 0x7bd   :  { %743 = vmatpush.bf16.msra.mxu1 %v1641_v49 }
 0x7e8   :  { %v520_v22 = vpop.permute.xlu2 %519 }
 0x7e9   :  { %v522_v23 = vmul.f32 %v520_v22, %v513_v12 }
 0x7eb   :  { %524 = vrot.lane.b32.xlu1 %v522_v23, %s1863_s3 }
 0x82a   :  { %v601_v24 = vpop.permute.xlu0 %600 }
 0x82b   :  { %v603_v25 = vmul.f32 %v601_v24, %v597_v21 }
 0x82d   :  { %605 = vrot.lane.b32.xlu2 %v603_v25, %s1863_s3 }
 0x85d   :  { %v525_v28 = vpop.permute.xlu1 %524 }
 0x85e   :  { %v2058_v29 = vadd.f32 %v525_v28, %v517_v27  ;;  %v1646_v28 = vld [vmem:[#allocation7 + $0x8] sm:$0xff] }
 0x85f   :  { %804 = vmatpush.bf16.msra.mxu2 %v1646_v28 }
 0x860   :  { %1705 = vtanh.f32 %v2058_v29  ;;  %v667_v13 = vrot.slane %v2058_v29, 7  ;;  %v1645_v29 = vld [vmem:[#allocation7] sm:$0xff] }
 0x863   :  { %805 = vmatpush.bf16.msra.mxu2 %v1645_v29 }
 0x866   :  { %v1706_v30 = vpop.eup %1705 }
 0x867   :  { %530 = vrot.lane.b32.xlu0 %v1706_v30, %s1858_s11 }
 0x887   :  { %v606_v32 = vpop.permute.xlu2 %605 }
 0x888   :  { %v2063_v33 = vadd.f32 %v606_v32, %v598_v31 }
 0x88a   :  { %1707 = vtanh.f32 %v2063_v33 }
 0x890   :  { %v1708_v34 = vpop.eup %1707 }
 0x891   :  { %611 = vrot.lane.b32.xlu1 %v1708_v34, %s1858_s11  ;;  %v1649_v34 = vld [vmem:[%s2308_s4 + $0x10] sm:$0xff] }
 0x8d9   :  { %v531_v35 = vpop.permute.xlu0 %530 }
 0x8da   :  { %v533_v36 = vmul.f32 %v531_v35, %v513_v12  ;;  %v1648_v35 = vld [vmem:[%s2308_s4 + $0x8] sm:$0xff] }
 0x8dc   :  { %v620_v37 = vpack.c.bf16 %v533_v36, %v533_v36  ;;  %687 = vrot.lane.b32.xlu0 %v533_v36, %s1863_s3 }
 0x8de   :  { %v626_v38 = vshrl.u32 %v620_v37, 16  ;;  %v1647_v37 = vld [vmem:[%s2308_s4] sm:$0xff] }
 0x8e0   :  { %v628_v39 = vrot.slane %v626_v38, 1 }
 0x8e2   :  { %629 = vrot.lane.b32.xlu2 %v628_v39, %s1863_s3 }
 0x903   :  { %v612_v42 = vpop.permute.xlu1 %611 }
 0x904   :  { %v2069_v43 = vmul.f32 %v612_v42, %v597_v21 }
 0x906   :  { %v690_v44 = vrot.slane %v2069_v43, 5 }
 0x908   :  { %691 = vrot.lane.b32.xlu1 %v690_v44, %s1858_s11 }
 0x93c   :  { %v630_v48 = vpop.permute.xlu2 %629 }
 0x93d   :  { %1505 = vmatmul.msk.bf16.vlgmr.msrb.gmra.mxu3 %vm151_vm4, %v630_v48 }
 0x94e   :  { %v688_v50 = vpop.permute.xlu0 %687 }
 0x97a   :  { %v692_v51 = vpop.permute.xlu1 %691 }
 0x97b   :  { %v694_v52 = vsel %vm151_vm4, %v688_v50, %v692_v51  ;;  %v856_v51 = vld [vmem:[%s2309_s5] sm:$0x1] }
 0x97c   :  { %v695_v53 = vpack.c.bf16 %v694_v52, %v694_v52 }
 0x97e   :  { %v706_v54 = vshrl.u32 %v695_v53, 16 }
 0x980   :  { %v708_v55 = vrot.slane %v706_v54, 1 }
 0x982   :  { %1522 = vmatmul.msk.bf16.vlgmr.msra.gmra.mxu1 %vm275_vm5, %v708_v55 }
 0x9c0   :  { %v655_v57 = vpop.f32.mrf.mxu3 }
 0x9c1   :  { %v660_v58 = vrot.slane %v655_v57, 4 }
 0x9c3   :  { %v662_v59 = vadd.f32 %v660_v58, %v1936_v9 }
 0x9c5   :  { %1709 = vtanh.f32 %v662_v59 }
 0x9c8   :  { %v657_v60 = vpop.f32.mrf.mxu3 }
 0x9cb   :  { %v1710_v61 = vpop.eup %1709 }
 0x9cc   :  { %v664_v62 = vmul.f32 %v1710_v61, %v1939_v14 }
 0x9ce   :  { %v665_v63 = vadd.f32 %v664_v62, %v1941_v17 }
 0x9d0   :  { %671 = vrot.lane.b32.xlu2 %v665_v63, %s1858_s11  ;;  %v669_v15 = vmul.f32 %v667_v13, %v665_v63 }
 0x9ff   :  { %v745_v1 = vpop.f32.mrf.mxu1 }
 0xa00   :  { %v746_v3 = vadd.f32 %v745_v1, %v704_v0 }
 0xa02   :  { %1711 = vtanh.f32 %v746_v3 }
 0xa07   :  { %v747_v4 = vpop.f32.mrf.mxu1 }
 0xa08   :  { %v1712_v5 = vpop.eup %1711 }
 0xa09   :  { %v750_v6 = vmul.f32 %v1712_v5, %v1939_v14 }
 0xa0b   :  { %v751_v7 = vadd.f32 %v750_v6, %v1941_v17 }
 0xa0d   :  { %754 = vrot.lane.b32.xlu0 %v751_v7, %s1858_s11  ;;  %v752_v20 = vmul.f32 %v751_v7, %v2063_v33  ;;  %v1650_v33 = vld [vmem:[%s2308_s4 + $0x18] sm:$0xff] }
 0xa0e   :  { %890 = vmatpush.bf16.msrb.mxu0 %v1650_v33 }
 0xa12   :  { %891 = vmatpush.bf16.msrb.mxu0 %v1649_v34 }
 0xa16   :  { %892 = vmatpush.bf16.msrb.mxu0 %v1648_v35 }
 0xa1a   :  { %893 = vmatpush.bf16.msrb.mxu0 %v1647_v37 }
 0xa2a   :  { %v672_v8 = vpop.permute.xlu2 %671 }
 0xa2b   :  { %v674_v10 = vmul.f32 %v672_v8, %v665_v63 }
 0xa2d   :  { %676 = vrot.lane.b32.xlu1 %v674_v10, %s1863_s3 }
 0xa7f   :  { %v755_v11 = vpop.permute.xlu0 %754 }
 0xa80   :  { %v757_v12 = vmul.f32 %v755_v11, %v751_v7 }
 0xa82   :  { %759 = vrot.lane.b32.xlu2 %v757_v12, %s1863_s3 }
 0xa9f   :  { %v677_v16 = vpop.permute.xlu1 %676 }
 0xaa0   :  { %v2101_v18 = vadd.f32 %v677_v16, %v669_v15  ;;  %v1652_v16 = vld [vmem:[#allocation7 + $0x8] sm:$0xff] }
 0xaa1   :  { %956 = vmatpush.bf16.msra.mxu3 %v1652_v16 }
 0xaa2   :  { %1713 = vtanh.f32 %v2101_v18 }
 0xaa8   :  { %v1714_v19 = vpop.eup %1713 }
 0xaa9   :  { %682 = vrot.lane.b32.xlu0 %v1714_v19, %s1858_s11 }
 0xadc   :  { %v760_v21 = vpop.permute.xlu2 %759 }
 0xadd   :  { %v2106_v22 = vadd.f32 %v760_v21, %v752_v20 }
 0xadf   :  { %1715 = vtanh.f32 %v2106_v22 }
 0xae5   :  { %v1716_v23 = vpop.eup %1715 }
 0xae6   :  { %765 = vrot.lane.b32.xlu1 %v1716_v23, %s1858_s11  ;;  %v1655_v23 = vld [vmem:[%s2308_s4 + $0x10] sm:$0xff] }
 0xb1b   :  { %v683_v24 = vpop.permute.xlu0 %682 }
 0xb1c   :  { %v685_v25 = vmul.f32 %v683_v24, %v665_v63  ;;  %v819_v63 = vrot.slane %v2101_v18, 7  ;;  %v1651_v18 = vld [vmem:[#allocation7] sm:$0xff]  ;;  %v1654_v24 = vld [vmem:[%s2308_s4 + $0x8] sm:$0xff] }
 0xb1d   :  { %957 = vmatpush.bf16.msra.mxu3 %v1651_v18 }
 0xb1e   :  { %v774_v26 = vpack.c.bf16 %v685_v25, %v685_v25  ;;  %839 = vrot.lane.b32.xlu0 %v685_v25, %s1863_s3 }
 0xb20   :  { %v780_v27 = vrot.slane %v774_v26, 2  ;;  %v1653_v26 = vld [vmem:[%s2308_s4] sm:$0xff] }
 0xb22   :  { %781 = vrot.lane.b32.xlu2 %v780_v27, %s1863_s3 }
 0xb58   :  { %v766_v30 = vpop.permute.xlu1 %765 }
 0xb59   :  { %v2112_v31 = vmul.f32 %v766_v30, %v751_v7 }
 0xb5b   :  { %v842_v32 = vrot.slane %v2112_v31, 4 }
 0xb5d   :  { %843 = vrot.lane.b32.xlu1 %v842_v32, %s1858_s11 }
 0xb7c   :  { %v782_v36 = vpop.permute.xlu2 %781 }
 0xb7d   :  { %1531 = vmatmul.msk.bf16.vlgmr.msra.gmra.mxu2 %vm151_vm4, %v782_v36 }
 0xb90   :  { %v840_v38 = vpop.permute.xlu0 %839 }
 0xbcf   :  { %v844_v39 = vpop.permute.xlu1 %843 }
 0xbd0   :  { %v846_v40 = vsel %vm151_vm4, %v840_v38, %v844_v39 }
 0xbd1   :  { %v847_v41 = vpack.c.bf16 %v846_v40, %v846_v40 }
 0xbd3   :  { %v858_v42 = vrot.slane %v847_v41, 2  ;;  %v1008_v41 = vld [vmem:[%s2309_s5] sm:$0x1] }
 0xbd5   :  { %1548 = vmatmul.msk.bf16.vlgmr.msrb.gmra.mxu0 %vm275_vm5, %v858_v42 }
 0xc00   :  { %v807_v44 = vpop.f32.mrf.mxu2 }
 0xc01   :  { %v812_v45 = vrot.slane %v807_v44, 3 }
 0xc03   :  { %v814_v46 = vadd.f32 %v812_v45, %v1936_v9 }
 0xc05   :  { %1717 = vtanh.f32 %v814_v46 }
 0xc08   :  { %v809_v47 = vpop.f32.mrf.mxu2 }
 0xc0b   :  { %v1718_v48 = vpop.eup %1717 }
 0xc0c   :  { %v816_v49 = vmul.f32 %v1718_v48, %v1939_v14 }
 0xc0e   :  { %v817_v50 = vadd.f32 %v816_v49, %v1941_v17 }
 0xc10   :  { %823 = vrot.lane.b32.xlu2 %v817_v50, %s1858_s11  ;;  %v821_v0 = vmul.f32 %v819_v63, %v817_v50  ;;  %v1657_v63 = vld [vmem:[#allocation7] sm:$0xff] }
 0xc52   :  { %v895_v52 = vpop.f32.mrf.mxu0 }
 0xc53   :  { %v896_v53 = vadd.f32 %v895_v52, %v856_v51 }
 0xc55   :  { %1719 = vtanh.f32 %v896_v53 }
 0xc5a   :  { %v897_v54 = vpop.f32.mrf.mxu0 }
 0xc5b   :  { %v1720_v55 = vpop.eup %1719 }
 0xc5c   :  { %v900_v57 = vmul.f32 %v1720_v55, %v1939_v14 }
 0xc5e   :  { %v901_v58 = vadd.f32 %v900_v57, %v1941_v17 }
 0xc60   :  { %904 = vrot.lane.b32.xlu0 %v901_v58, %s1858_s11  ;;  %v902_v5 = vmul.f32 %v901_v58, %v2106_v22  ;;  %v1656_v22 = vld [vmem:[%s2308_s4 + $0x18] sm:$0xff] }
 0xc61   :  { %1044 = vmatpush.bf16.msrb.mxu1 %v1656_v22 }
 0xc65   :  { %1045 = vmatpush.bf16.msrb.mxu1 %v1655_v23 }
 0xc69   :  { %1046 = vmatpush.bf16.msrb.mxu1 %v1654_v24 }
 0xc6a   :  { %v824_v59 = vpop.permute.xlu2 %823 }
 0xc6b   :  { %v826_v60 = vmul.f32 %v824_v59, %v817_v50 }
 0xc6d   :  { %828 = vrot.lane.b32.xlu1 %v826_v60, %s1863_s3  ;;  %1047 = vmatpush.bf16.msrb.mxu1 %v1653_v26 }
 0xcd2   :  { %v905_v61 = vpop.permute.xlu0 %904 }
 0xcd3   :  { %v907_v62 = vmul.f32 %v905_v61, %v901_v58  ;;  %v1658_v61 = vld [vmem:[#allocation7 + $0x8] sm:$0xff] }
 0xcd4   :  { %1108 = vmatpush.bf16.msrb.mxu2 %v1658_v61 }
 0xcd5   :  { %909 = vrot.lane.b32.xlu2 %v907_v62, %s1863_s3 }
 0xcd8   :  { %1109 = vmatpush.bf16.msrb.mxu2 %v1657_v63 }
 0xcdf   :  { %v829_v1 = vpop.permute.xlu1 %828 }
 0xce0   :  { %v2144_v3 = vadd.f32 %v829_v1, %v821_v0 }
 0xce2   :  { %1721 = vtanh.f32 %v2144_v3  ;;  %v971_v51 = vrot.slane %v2144_v3, 7 }
 0xce8   :  { %v1722_v4 = vpop.eup %1721 }
 0xce9   :  { %834 = vrot.lane.b32.xlu0 %v1722_v4, %s1858_s11 }
 0xd2f   :  { %v910_v6 = vpop.permute.xlu2 %909 }
 0xd30   :  { %v2149_v7 = vadd.f32 %v910_v6, %v902_v5  ;;  %v1662_v6 = vld [vmem:[%s2308_s4 + $0x18] sm:$0xff] }
 0xd31   :  { %1194 = vmatpush.bf16.msra.mxu0 %v1662_v6 }
 0xd32   :  { %1723 = vtanh.f32 %v2149_v7 }
 0xd38   :  { %v1724_v8 = vpop.eup %1723 }
 0xd39   :  { %915 = vrot.lane.b32.xlu1 %v1724_v8, %s1858_s11  ;;  %v1660_v8 = vld [vmem:[%s2308_s4 + $0x8] sm:$0xff] }
 0xd5b   :  { %v835_v10 = vpop.permute.xlu0 %834 }
 0xd5c   :  { %v837_v11 = vmul.f32 %v835_v10, %v817_v50 }
 0xd5e   :  { %v924_v12 = vpack.c.bf16 %v837_v11, %v837_v11  ;;  %991 = vrot.lane.b32.xlu0 %v837_v11, %s1863_s3 }
 0xd60   :  { %v930_v13 = vshrl.u32 %v924_v12, 16 }
 0xd62   :  { %v932_v15 = vrot.slane %v930_v13, 2 }
 0xd64   :  { %933 = vrot.lane.b32.xlu2 %v932_v15, %s1863_s3  ;;  %v1659_v15 = vld [vmem:[%s2308_s4] sm:$0xff] }
 0xdab   :  { %v916_v19 = vpop.permute.xlu1 %915 }
 0xdac   :  { %v2155_v20 = vmul.f32 %v916_v19, %v901_v58 }
 0xdae   :  { %v994_v21 = vrot.slane %v2155_v20, 3 }
 0xdb0   :  { %995 = vrot.lane.b32.xlu1 %v994_v21, %s1858_s11 }
 0xdbe   :  { %v934_v25 = vpop.permute.xlu2 %933 }
 0xdbf   :  { %1557 = vmatmul.msk.bf16.vlgmr.msra.gmra.mxu3 %vm151_vm4, %v934_v25 }
 0xdd0   :  { %v992_v27 = vpop.permute.xlu0 %991 }
 0xe22   :  { %v996_v28 = vpop.permute.xlu1 %995 }
 0xe23   :  { %v998_v29 = vsel %vm151_vm4, %v992_v27, %v996_v28 }
 0xe24   :  { %v999_v30 = vpack.c.bf16 %v998_v29, %v998_v29 }
 0xe26   :  { %v1010_v32 = vshrl.u32 %v999_v30, 16  ;;  %v1160_v30 = vld [vmem:[%s2309_s5] sm:$0x1] }
 0xe28   :  { %v1012_v33 = vrot.slane %v1010_v32, 2 }
 0xe2a   :  { %1574 = vmatmul.msk.bf16.vlgmr.msrb.gmra.mxu1 %vm275_vm5, %v1012_v33 }
 0xe42   :  { %v959_v34 = vpop.f32.mrf.mxu3 }
 0xe43   :  { %v964_v35 = vrot.slane %v959_v34, 2 }
 0xe45   :  { %v966_v36 = vadd.f32 %v964_v35, %v1936_v9 }
 0xe47   :  { %1725 = vtanh.f32 %v966_v36 }
 0xe4a   :  { %v961_v37 = vpop.f32.mrf.mxu3 }
 0xe4d   :  { %v1726_v38 = vpop.eup %1725 }
 0xe4e   :  { %v968_v39 = vmul.f32 %v1726_v38, %v1939_v14 }
 0xe50   :  { %v969_v40 = vadd.f32 %v968_v39, %v1941_v17 }
 0xe52   :  { %975 = vrot.lane.b32.xlu2 %v969_v40, %s1858_s11  ;;  %v973_v52 = vmul.f32 %v971_v51, %v969_v40 }
 0xea7   :  { %v1049_v42 = vpop.f32.mrf.mxu1 }
 0xea8   :  { %v1050_v44 = vadd.f32 %v1049_v42, %v1008_v41 }
 0xeaa   :  { %1727 = vtanh.f32 %v1050_v44 }
 0xeac   :  { %v976_v45 = vpop.permute.xlu2 %975 }
 0xead   :  { %v978_v46 = vmul.f32 %v976_v45, %v969_v40 }
 0xeaf   :  { %v1051_v47 = vpop.f32.mrf.mxu1  ;;  %980 = vrot.lane.b32.xlu1 %v978_v46, %s1863_s3 }
 0xeb0   :  { %v1728_v48 = vpop.eup %1727 }
 0xeb1   :  { %v1054_v49 = vmul.f32 %v1728_v48, %v1939_v14 }
 0xeb3   :  { %v1055_v50 = vadd.f32 %v1054_v49, %v1941_v17 }
 0xeb5   :  { %1058 = vrot.lane.b32.xlu0 %v1055_v50, %s1858_s11  ;;  %v1056_v59 = vmul.f32 %v1055_v50, %v2149_v7  ;;  %v1661_v7 = vld [vmem:[%s2308_s4 + $0x10] sm:$0xff] }
 0xeb6   :  { %1195 = vmatpush.bf16.msra.mxu0 %v1661_v7 }
 0xeba   :  { %1196 = vmatpush.bf16.msra.mxu0 %v1660_v8 }
 0xebe   :  { %1197 = vmatpush.bf16.msra.mxu0 %v1659_v15 }
 0xf21   :  { %v981_v53 = vpop.permute.xlu1 %980 }
 0xf22   :  { %v2186_v54 = vadd.f32 %v981_v53, %v973_v52  ;;  %v1666_v53 = vld [vmem:[%s2308_s4 + $0x18] sm:$0xff] }
 0xf23   :  { %1282 = vmatpush.bf16.msrb.mxu3 %v1666_v53 }
 0xf24   :  { %1729 = vtanh.f32 %v2186_v54  ;;  %v1123_v41 = vrot.slane %v2186_v54, 7  ;;  %v1665_v54 = vld [vmem:[%s2308_s4 + $0x10] sm:$0xff] }
 0xf27   :  { %v1059_v55 = vpop.permute.xlu0 %1058  ;;  %1283 = vmatpush.bf16.msrb.mxu3 %v1665_v54 }
 0xf28   :  { %v1061_v57 = vmul.f32 %v1059_v55, %v1055_v50  ;;  %v1664_v55 = vld [vmem:[%s2308_s4 + $0x8] sm:$0xff] }
 0xf2a   :  { %v1730_v58 = vpop.eup %1729  ;;  %1063 = vrot.lane.b32.xlu2 %v1061_v57, %s1863_s3 }
 0xf2b   :  { %986 = vrot.lane.b32.xlu0 %v1730_v58, %s1858_s11  ;;  %1284 = vmatpush.bf16.msrb.mxu3 %v1664_v55 }
 0xf84   :  { %v1064_v60 = vpop.permute.xlu2 %1063 }
 0xf85   :  { %v2192_v62 = vadd.f32 %v1064_v60, %v1056_v59  ;;  %v1663_v60 = vld [vmem:[%s2308_s4] sm:$0xff] }
 0xf86   :  { %1285 = vmatpush.bf16.msrb.mxu3 %v1663_v60 }
 0xf87   :  { %1731 = vtanh.f32 %v2192_v62 }
 0xf8d   :  { %v1732_v0 = vpop.eup %1731 }
 0xf8e   :  { %1069 = vrot.lane.b32.xlu1 %v1732_v0, %s1858_s11 }
 0xf9d   :  { %v987_v1 = vpop.permute.xlu0 %986 }
 0xf9e   :  { %v989_v3 = vmul.f32 %v987_v1, %v969_v40 }
 0xfa0   :  { %v1078_v4 = vpack.c.bf16 %v989_v3, %v989_v3  ;;  %1143 = vrot.lane.b32.xlu0 %v989_v3, %s1863_s3 }
 0xfa2   :  { %v1084_v5 = vrot.slane %v1078_v4, 3  ;;  %v1246_v4 = vld [vmem:[%s2309_s5] sm:$0x1] }
 0xfa4   :  { %1085 = vrot.lane.b32.xlu2 %v1084_v5, %s1863_s3 }
 0xffe   :  { %v1086_v10 = vpop.permute.xlu2 %1085 }
 0xfff   :  { %1583 = vmatmul.msk.bf16.vlgmr.msrb.gmra.mxu2 %vm151_vm4, %v1086_v10 }
0x1000   :  { %v1070_v11 = vpop.permute.xlu1 %1069 }
0x1001   :  { %v2208_v12 = vmul.f32 %v1070_v11, %v1055_v50 }
0x1003   :  { %v1146_v13 = vrot.slane %v2208_v12, 2 }
0x1005   :  { %1147 = vrot.lane.b32.xlu1 %v1146_v13, %s1858_s11 }
0x1012   :  { %v1144_v16 = vpop.permute.xlu0 %1143 }
0x1077   :  { %v1148_v18 = vpop.permute.xlu1 %1147 }
0x1078   :  { %v1150_v19 = vsel %vm151_vm4, %v1144_v16, %v1148_v18 }
0x1079   :  { %v1151_v21 = vpack.c.bf16 %v1150_v19, %v1150_v19 }
0x107b   :  { %v1162_v22 = vrot.slane %v1151_v21, 3 }
0x107d   :  { %1600 = vmatmul.msk.bf16.vlgmr.msra.gmra.mxu0 %vm275_vm5, %v1162_v22  ;;  %v1319_v22 = vld [vmem:[#allocation8 + $0x10] sm:$0xff] }
0x1082   :  { %v1111_v23 = vpop.f32.mrf.mxu2 }
0x1083   :  { %v1116_v24 = vrot.slane %v1111_v23, 1 }
0x1085   :  { %v1118_v25 = vadd.f32 %v1116_v24, %v1936_v9 }
0x1087   :  { %1733 = vtanh.f32 %v1118_v25 }
0x108a   :  { %v1113_v26 = vpop.f32.mrf.mxu2 }
0x108d   :  { %v1734_v27 = vpop.eup %1733 }
0x108e   :  { %v1120_v28 = vmul.f32 %v1734_v27, %v1939_v14  ;;  %v1318_v27 = vld [vmem:[#allocation8 + $0x8] sm:$0xff] }
0x1090   :  { %v1121_v29 = vadd.f32 %v1120_v28, %v1941_v17  ;;  %v1317_v28 = vld [vmem:[#allocation8] sm:$0xff] }
0x1092   :  { %1127 = vrot.lane.b32.xlu0 %v1121_v29, %s1858_s11  ;;  %v1125_v42 = vmul.f32 %v1123_v41, %v1121_v29 }
0x10fa   :  { %v1199_v32 = vpop.f32.mrf.mxu0 }
0x10fb   :  { %v1200_v33 = vadd.f32 %v1199_v32, %v1160_v30  ;;  %v1350_v32 = vld [vmem:[%s2312_s8 + $0x8] sm:$0xff] }
0x10fd   :  { %1735 = vtanh.f32 %v1200_v33  ;;  %v1349_v33 = vld [vmem:[%s2312_s8] sm:$0xff] }
0x1102   :  { %v1201_v34 = vpop.f32.mrf.mxu0 }
0x1103   :  { %v1736_v35 = vpop.eup %1735  ;;  %v1679_v34 = vld [vmem:[%s2311_s7] ss:$0 sm:$0xff] }
0x1104   :  { %v1204_v9 = vmul.f32 %v1736_v35, %v1939_v14  ;;  %v1128_v37 = vpop.permute.xlu0 %1127 }
0x1105   :  { %v1130_v38 = vmul.f32 %v1128_v37, %v1121_v29  ;;  %v1680_v37 = vld [vmem:[%s2313_s9] ss:$0 sm:$0xff] }
0x1106   :  { %v1205_v36 = vadd.f32 %v1204_v9, %v1941_v17 }
0x1108   :  { %1208 = vrot.lane.b32.xlu2 %v1205_v36, %s1858_s11  ;;  %v1206_v47 = vmul.f32 %v1205_v36, %v2192_v62 }
0x1110   :  { %1132 = vrot.lane.b32.xlu2 %v1130_v38, %s1863_s3 }
0x1162   :  { %v1209_v39 = vpop.permute.xlu2 %1208 }
0x1163   :  { %v1211_v40 = vmul.f32 %v1209_v39, %v1205_v36 }
0x1165   :  { %1213 = vrot.lane.b32.xlu1 %v1211_v40, %s1863_s3 }
0x116a   :  { %v1133_v44 = vpop.permute.xlu2 %1132 }
0x116b   :  { %v1135_v45 = vadd.f32 %v1133_v44, %v1125_v42 }
0x116d   :  { %1737 = vtanh.f32 %v1135_v45 }
0x1173   :  { %v1738_v46 = vpop.eup %1737 }
0x1174   :  { %1138 = vrot.lane.b32.xlu1 %v1738_v46, %s1858_s11 }
0x11d7   :  { %v1214_v48 = vpop.permute.xlu1 %1213 }
0x11d8   :  { %v1216_v49 = vadd.f32 %v1214_v48, %v1206_v47 }
0x11da   :  { %1739 = vtanh.f32 %v1216_v49 }
0x11e0   :  { %v1740_v50 = vpop.eup %1739 }
0x11e1   :  { %1219 = vrot.lane.b32.xlu0 %v1740_v50, %s1858_s11 }
0x11e6   :  { %v1139_v51 = vpop.permute.xlu1 %1138 }
0x11e7   :  { %v1141_v52 = vmul.f32 %v1139_v51, %v1121_v29 }
0x11e9   :  { %1229 = vrot.lane.b32.xlu2 %v1141_v52, %s1863_s3 }
0x1243   :  { %v1230_v61 = vpop.permute.xlu2 %1229 }
0x1253   :  { %v1220_v57 = vpop.permute.xlu0 %1219 }
0x1254   :  { %v1222_v58 = vmul.f32 %v1220_v57, %v1205_v36 }
0x1256   :  { %v1232_v59 = vrot.slane %v1222_v58, 1 }
0x1258   :  { %1233 = vrot.lane.b32.xlu0 %v1232_v59, %s1858_s11 }
0x12ca   :  { %v1234_v62 = vpop.permute.xlu0 %1233 }
0x12cb   :  { %v1236_v63 = vsel %vm151_vm4, %v1230_v61, %v1234_v62 }
0x12cc   :  { %v1237_v0 = vpack.c.bf16 %v1236_v63, %v1236_v63 }
0x12ce   :  { %v1248_v1 = vshrl.u32 %v1237_v0, 16 }
0x12d0   :  { %v1250_v3 = vrot.slane %v1248_v1, 3 }
0x12d2   :  { %1617 = vmatmul.msk.bf16.vlgmr.msrb.gmra.mxu3 %vm275_vm5, %v1250_v3 }
0x1355   :  { %v1287_v5 = vpop.f32.mrf.mxu3 }
0x1356   :  { %v1288_v6 = vadd.f32 %v1287_v5, %v1246_v4 }
0x1358   :  { %1741 = vtanh.f32 %v1288_v6 }
0x135d   :  { %v1289_v7 = vpop.f32.mrf.mxu3 }
0x135e   :  { %v1742_v8 = vpop.eup %1741 }
0x135f   :  { %v1292_v10 = vmul.f32 %v1742_v8, %v1939_v14 }
0x1361   :  { %v1293_v11 = vadd.f32 %v1292_v10, %v1941_v17 }
0x1363   :  { %1296 = vrot.lane.b32.xlu1 %v1293_v11, %s1858_s11 }
0x136b   :  { %313 = vrot.lane.b32.xlu1 %v1982_v2, %s1863_s3  ;;  %v1294_v2 = vmul.f32 %v1293_v11, %v1216_v49 }
0x1373   :  { %770 = vrot.lane.b32.xlu1 %v2112_v31, %s1863_s3 }
0x137b   :  { %1224 = vrot.lane.b32.xlu1 %v1222_v58, %s1863_s3 }
0x13d5   :  { %v1297_v13 = vpop.permute.xlu1 %1296 }
0x13d6   :  { %v1299_v15 = vmul.f32 %v1297_v13, %v1293_v11 }
0x13d8   :  { %1301 = vrot.lane.b32.xlu2 %v1299_v15, %s1863_s3 }
0x13dd   :  { %v314_v16 = vpop.permute.xlu1 %313 }
0x13de   :  { %317 = vst.msk [vmem:[#allocation2] sm:$0x1] %vm316_vm6, %v314_v16 }
0x13e0   :  { %466 = vrot.lane.b32.xlu2 %v2026_v56, %s1863_s3 }
0x13e5   :  { %v771_v14 = vpop.permute.xlu1 %770 }
0x13e6   :  { %773 = vst.msk [vmem:[#allocation2 + $0x3] sm:$0x1] %vm316_vm6, %v771_v14 }
0x13e8   :  { %920 = vrot.lane.b32.xlu2 %v2155_v20, %s1863_s3  ;;  %v1320_v20 = vld [vmem:[#allocation8 + $0x18] sm:$0xff] }
0x13e9   :  { %1340 = vmatpush.msra.mxu1 %v1320_v20 }
0x13eb   :  { %1341 = vmatpush.msra.mxu1 %v1319_v22 }
0x13ed   :  { %v1225_v17 = vpop.permute.xlu1 %1224  ;;  %1342 = vmatpush.msra.mxu1 %v1318_v27 }
0x13ee   :  { %1227 = vst.msk [vmem:[#allocation2 + $0x6] sm:$0x1] %vm316_vm6, %v1225_v17 }
0x13ef   :  { %1343 = vmatpush.msra.mxu1 %v1317_v28 }
0x1432   :  { %v1302_v31 = vpop.permute.xlu2 %1301 }
0x1433   :  { %v1304_v18 = vadd.f32 %v1302_v31, %v1294_v2 }
0x1435   :  { %1743 = vtanh.f32 %v1304_v18 }
0x143a   :  { %v467_v19 = vpop.permute.xlu2 %466 }
0x143b   :  { %v1744_v21 = vpop.eup %1743  ;;  %469 = vst.msk [vmem:[#allocation2 + $0x1] sm:$0x1] %vm316_vm6, %v467_v19 }
0x143c   :  { %1307 = vrot.lane.b32.xlu0 %v1744_v21, %s1858_s11 }
0x1442   :  { %v921_v56 = vpop.permute.xlu2 %920 }
0x1443   :  { %923 = vst.msk [vmem:[#allocation2 + $0x4] sm:$0x1] %vm316_vm6, %v921_v56 }
0x1444   :  { %616 = vrot.lane.b32.xlu0 %v2069_v43, %s1863_s3  ;;  %v1352_v43 = vld [vmem:[%s2312_s8 + $0x18] sm:$0x3] }
0x1445   :  { %1619 = vmatpush.msk.msra.mxu2 %vm1361_vm7, %v1352_v43 }
0x144c   :  { %1074 = vrot.lane.b32.xlu0 %v2208_v12, %s1863_s3  ;;  %v1351_v12 = vld [vmem:[%s2312_s8 + $0x10] sm:$0xff] }
0x144d   :  { %1378 = vmatpush.msra.mxu2 %v1351_v12 }
0x144f   :  { %1379 = vmatpush.msra.mxu2 %v1350_v32 }
0x1451   :  { %1380 = vmatpush.msra.mxu2 %v1349_v33 }
0x14ae   :  { %v1308_v23 = vpop.permute.xlu0 %1307 }
0x14af   :  { %v1310_v24 = vmul.f32 %v1308_v23, %v1293_v11 }
0x14b1   :  { %1312 = vrot.lane.b32.xlu2 %v1310_v24, %s1863_s3 }
0x14b6   :  { %v617_v25 = vpop.permute.xlu0 %616 }
0x14b7   :  { %619 = vst.msk [vmem:[#allocation2 + $0x2] sm:$0x1] %vm316_vm6, %v617_v25 }
0x14be   :  { %v1075_v26 = vpop.permute.xlu0 %1074 }
0x14bf   :  { %1077 = vst.msk [vmem:[#allocation2 + $0x5] sm:$0x1] %vm316_vm6, %v1075_v26 }
0x150b   :  { %v1313_v29 = vpop.permute.xlu2 %1312 }
0x150c   :  { %1315 = vst.msk [vmem:[#allocation2 + $0x7] sm:$0x1] %vm316_vm6, %v1313_v29 }
0x1513   :  { %v1316_v30 = vld [vmem:[#allocation2] sm:$0xff] }
0x1514   :  { %1618 = vmatmul.msk.f32.vlgmr.msra.gmra.mxu1 %vm151_vm4, %v1316_v30 }
0x1591   :  { %v1345_v35 = vpop.f32.mrf.mxu1 }
0x1592   :  { %v1346_v9 = vadd.f32 %v1679_v34, %v1345_v35 }
0x1594   :  { %1745 = vtanh.f32 %v1346_v9 }
0x159a   :  { %v1746_v36 = vpop.eup %1745 }
0x159b   :  { %1620 = vmatmul.msk.f32.vlgmr.msra.gmra.mxu2 %vm1357_vm8, %v1746_v36 }
0x161e   :  { %v1382_v38 = vpop.f32.mrf.mxu2 }
0x161f   :  { %v1383_v39 = vadd.f32 %v1680_v37, %v1382_v38 }
0x1621   :  { %v1386_v40 = vsel %vm1385_vm9, %v1383_v39, -inf }
0x1622   :  { %1387 = vmax.xlane.f32.xlu0 %v1386_v40 }
0x1695   :  { %v1388_v41 = vpop.xlane.xlu0 %1387 }
0x1696   :  { %v1389_v42 = vsub.f32 %v1383_v39, %v1388_v41 }
0x1698   :  { %v1390_v44 = vmul.f32 1.442695, %v1389_v42 }
0x169a   :  { %1747 = vpow2.f32 %v1390_v44 }
0x16a0   :  { %v1748_v45 = vpop.eup %1747 }
0x16a1   :  { %v1392_v46 = vsel %vm1385_vm9, %v1748_v45, 0.0 }
0x16a2   :  { %1393 = vadd.xlane.f32.xlu1 %v1392_v46 }
0x1715   :  { %v1394_v47 = vpop.xlane.xlu1 %1393 }
0x1716   :  { %1749 = vrcp.f32 %v1394_v47  ;;  %v1406_v51 = vand.u32 2147483648, %v1394_v47  ;;  %v1404_v53 = vand.u32 2147483647, %v1394_v47  ;;  %vm1400_vm11 = vweird.f32 %v1394_v47 }
0x1718   :  { %v1407_v55 = vor.u32 1.1754944e-38, %v1406_v51  ;;  %vm1405_vm13 = vcmp.eq.f32.partialorder %v1404_v53, 8.507059e+37 }
0x171c   :  { %v1750_v48 = vpop.eup %1749 }
0x171d   :  { %v1396_v49 = vmul.f32 %v1750_v48, %v1394_v47  ;;  %vm1401_vm10 = vweird.f32 %v1750_v48 }
0x171e   :  { %vm1402_vm12 = vmor %vm1400_vm11, %vm1401_vm10 }
0x171f   :  { %v1397_v50 = vsub.f32 1.0, %v1396_v49 }
0x1721   :  { %v1398_v52 = vmul.f32 %v1750_v48, %v1397_v50 }
0x1723   :  { %v1399_v54 = vadd.f32 %v1750_v48, %v1398_v52 }
0x1725   :  { %v1403_v57 = vsel %vm1402_vm12, %v1750_v48, %v1399_v54 }
0x1726   :  { %v1408_v58 = vsel %vm1405_vm13, %v1407_v55, %v1403_v57 }
0x1727   :  { %v1409_v59 = vmul.f32 %v1748_v45, %v1408_v58 }
0x1729   :  { %1410 = vst.msk [vmem:[%s2314_s10] sm:$0xff] %vm1385_vm9, %v1409_v59 }
0x172a   :  { %1415 = vsyncpa [#allocation4], 1 }
0x172b   :  { %1416 = vsyncpa [#allocation6], 1 }
0x172c   :  { %1417 = vsyncpa [#allocation9], 1 }

</bundles_post_ra>
